<compile_context>
chip_gen: v5e
topology: v5e:2x2
jax: 0.10.0
libtpu: 0.0.40
codegen_flags: <defaults>
</compile_context>

<pallas_src>
from functools import partial

import jax
import jax.numpy as jnp
import numpy as np
from jax.experimental import pallas as pl
from jax.experimental.pallas import tpu as pltpu


def _fused_conv_chain_kernel(x_ref, w_ref, b_ref, o_ref):
    # x_ref: (C_in, tile) VMEM   -- channels on sublanes, spatial on lanes
    # w_ref: (C_out, C_in) VMEM  -- folded weights, resident across the grid
    # b_ref: (C_out,) SMEM       -- folded bias scalar
    # o_ref: (C_out, tile) VMEM  -- lane-dense output tile
    y = jnp.dot(w_ref[...], x_ref[...], preferred_element_type=jnp.float32)
    o_ref[...] = (y + b_ref[0]).astype(o_ref.dtype)


def _pick_spatial_tile(hw, max_tile):
    # Prefer the full spatial extent (one contiguous DMA per image); otherwise
    # the largest multiple of 128 that divides hw and is <= max_tile.
    if hw <= max_tile:
        return hw
    cap = min(max_tile, hw)
    for cand in range(cap - cap % 128, 127, -128):
        if hw % cand == 0:
            return cand
    return 128


@partial(jax.jit, static_argnames=("thw",))
def conv_transpose_chain(x_nchw, params, *, thw=4096):
    """x_nchw: (N, 128, H, W) float32 -> (N, 1, H, W) float32."""
    (w1, b1), (w2, b2), (w3, b3), (w4, b4) = params
    N, C_in, H, W = x_nchw.shape
    assert C_in == w1.shape[0]
    C_out = w4.shape[1]

    # Fold the affine chain: y = x @ W_eff + b_eff  (per pixel).
    w_eff = w1 @ w2 @ w3 @ w4                                  # (C_in, C_out)
    b_eff = ((b1 @ w2 + b2) @ w3 + b3) @ w4 + b4               # (C_out,)
    w_eff_t = jnp.transpose(w_eff)                             # (C_out, C_in)

    HW = H * W
    assert HW % 128 == 0, "H*W must be a multiple of 128 (pad spatially otherwise)"
    tile = _pick_spatial_tile(HW, thw)
    spatial_steps = HW // tile

    # Pure reshape (metadata under jit): channels stay contiguous on sublanes,
    # spatial (lane) axis is last.
    x3 = x_nchw.reshape(N, C_in, HW)

    # Activation tile spec: (C_in, tile), batch dim squeezed.  With tile == HW
    # every DMA is one contiguous (C_in, HW) slab.  Only deepen pipelining when
    # there are enough spatial steps per image for it to matter.
    if spatial_steps >= 3:
        x_spec = pl.BlockSpec((None, C_in, tile), lambda n, j: (n, 0, j),
                              pipeline_mode=pl.Buffered(3))
    else:
        x_spec = pl.BlockSpec((None, C_in, tile), lambda n, j: (n, 0, j))

    out3 = pl.pallas_call(
        _fused_conv_chain_kernel,
        out_shape=jax.ShapeDtypeStruct((N, C_out, HW), jnp.float32),
        grid_spec=pltpu.PrefetchScalarGridSpec(
            num_scalar_prefetch=0,
            grid=(N, spatial_steps),
            in_specs=[
                x_spec,
                # folded weight, same block every step (stays resident in VMEM)
                pl.BlockSpec((C_out, C_in), lambda n, j: (0, 0)),
                # folded bias scalar via SMEM
                pl.BlockSpec(memory_space=pltpu.MemorySpace.SMEM),
            ],
            out_specs=pl.BlockSpec((None, C_out, tile), lambda n, j: (n, 0, j)),
        ),
        compiler_params=pltpu.CompilerParams(
            dimension_semantics=("parallel", "parallel")),
    )(x3, w_eff_t, b_eff)

    return out3.reshape(N, C_out, H, W)


def _init_convtranspose_params(key, c_in, c_out):
    # PyTorch ConvTranspose2d default init: uniform(-k, k), k = 1/sqrt(c_in*kH*kW)
    # weight shape (c_in, c_out, 1, 1) squeezed to (c_in, c_out)
    kw, kb = jax.random.split(key)
    bound = 1.0 / np.sqrt(c_in)
    w = jax.random.uniform(kw, (c_in, c_out), jnp.float32, -bound, bound)
    b = jax.random.uniform(kb, (c_out,), jnp.float32, -bound, bound)
    return w, b


def make_params(key):
    k1, k2, k3, k4 = jax.random.split(key, 4)
    return (
        _init_convtranspose_params(k1, 128, 64),
        _init_convtranspose_params(k2, 64, 32),
        _init_convtranspose_params(k3, 32, 4),
        _init_convtranspose_params(k4, 4, 1),
    )


def reference(x_nchw, params):
    # Pure-JAX reference of the original 4-layer chain (unfolded).
    (w1, b1), (w2, b2), (w3, b3), (w4, b4) = params
    h = jnp.transpose(x_nchw, (0, 2, 3, 1))
    h = h @ w1 + b1
    h = h @ w2 + b2
    h = h @ w3 + b3
    h = h @ w4 + b4
    return jnp.transpose(h, (0, 3, 1, 2))


if __name__ == "__main__":
    key = jax.random.PRNGKey(0)
    kx, kp = jax.random.split(key)

    # in_channels must be 128 per the module; HW = 4096 -> tile = HW,
    # grid (2, 1) = one step per v7x TensorCore.
    N, C, H, W = 2, 128, 64, 64
    x = jax.random.normal(kx, (N, C, H, W), jnp.float32)
    params = make_params(kp)

    out = conv_transpose_chain(x, params)
    jax.block_until_ready(out)

    ref = reference(x, params)
    np.testing.assert_allclose(np.asarray(out), np.asarray(ref),
                               rtol=1e-5, atol=1e-5)
    assert out.shape == (N, 1, H, W)
    print("KERNEL_OK")
</pallas_src>

<mosaic_0001>
module attributes {stable_mosaic.version = 11 : i64} {
  func.func @_fused_conv_chain_kernel(%arg0: i32, %arg1: i32, %arg2: memref<1x128x4096xf32, #tpu.memory_space<vmem>>, %arg3: memref<1x128xf32, #tpu.memory_space<vmem>>, %arg4: memref<1xf32, #tpu.memory_space<smem>>, %arg5: memref<1x1x4096xf32, #tpu.memory_space<vmem>>) attributes {dimension_semantics = [#tpu.dimension_semantics<parallel>, #tpu.dimension_semantics<parallel>], iteration_bounds = array<i64: 2, 1>, scalar_prefetch = 0 : i64, scratch_operands = 0 : i64, tpu.core_type = #tpu.core_type<tc>, window_params = [{transform_indices = @transform_0, window_bounds = array<i64: 1, 128, 4096>}, {pipeline_mode = #tpu.pipeline_mode<synchronous>, transform_indices = @transform_1, window_bounds = array<i64: 1, 128>}, {transform_indices = @transform_2, window_bounds = array<i64: 1>}, {transform_indices = @transform_3, window_bounds = array<i64: 1, 1, 4096>}]} {
    %c0 = arith.constant 0 : index
    %c0_0 = arith.constant 0 : index
    %0 = vector.load %arg3[%c0, %c0_0] : memref<1x128xf32, #tpu.memory_space<vmem>>, vector<1x128xf32>
    %c0_1 = arith.constant 0 : index
    %c0_2 = arith.constant 0 : index
    %c0_3 = arith.constant 0 : index
    %1 = vector.load %arg2[%c0_1, %c0_2, %c0_3] : memref<1x128x4096xf32, #tpu.memory_space<vmem>>, vector<1x128x4096xf32>
    %2 = vector.shape_cast %1 : vector<1x128x4096xf32> to vector<128x4096xf32>
    %cst = arith.constant dense<0.000000e+00> : vector<1x4096xf32>
    %3 = tpu.matmul %0, %2, %cst {dimension_numbers = #tpu.dot_dimension_numbers<[1], [0], [0], [1], [0, 0, 1, 1], [], []>} : vector<1x128xf32>, vector<128x4096xf32>, vector<1x4096xf32> -> vector<1x4096xf32>
    %c0_4 = arith.constant 0 : index
    %4 = memref.load %arg4[%c0_4] : memref<1xf32, #tpu.memory_space<smem>>
    %5 = vector.broadcast %4 : f32 to vector<1x4096xf32>
    %6 = arith.addf %3, %5 : vector<1x4096xf32>
    %c0_5 = arith.constant 0 : index
    %c0_6 = arith.constant 0 : index
    %c0_7 = arith.constant 0 : index
    %7 = vector.load %arg5[%c0_5, %c0_6, %c0_7] : memref<1x1x4096xf32, #tpu.memory_space<vmem>>, vector<1x1x4096xf32>
    %8 = vector.shape_cast %7 : vector<1x1x4096xf32> to vector<1x4096xf32>
    %9 = vector.shape_cast %6 : vector<1x4096xf32> to vector<1x1x4096xf32>
    tpu.vector_store %arg5[%c0_5, %c0_6, %c0_7], %9 {strides = array<i32>} : memref<1x1x4096xf32, #tpu.memory_space<vmem>>, vector<1x1x4096xf32>,
    return
  }
  func.func @transform_0(%arg0: i32, %arg1: i32) -> (i32, i32, i32) {
    %c0_i32 = arith.constant 0 : i32
    %c0_i32_0 = arith.constant 0 : i32
    return %arg0, %c0_i32, %arg1 : i32, i32, i32
  }
  func.func @transform_1(%arg0: i32, %arg1: i32) -> (i32, i32) {
    %c0_i32 = arith.constant 0 : i32
    %c0_i32_0 = arith.constant 0 : i32
    %c0_i32_1 = arith.constant 0 : i32
    return %c0_i32, %c0_i32_0 : i32, i32
  }
  func.func @transform_2(%arg0: i32, %arg1: i32) -> i32 {
    %c0_i32 = arith.constant 0 : i32
    %c0_i32_0 = arith.constant 0 : i32
    return %c0_i32 : i32
  }
  func.func @transform_3(%arg0: i32, %arg1: i32) -> (i32, i32, i32) {
    %c0_i32 = arith.constant 0 : i32
    %c0_i32_0 = arith.constant 0 : i32
    return %arg0, %c0_i32, %arg1 : i32, i32, i32
  }
}

</mosaic_0001>

<bundles_post_ra>
// kernel: conv_transpose_chain.1
= control target key start
LH: loop header
LB: loop body
LE: loop exit
PB: predicated region body
PF: predicated region fallthrough
CT: control target
= control target key end

     0   :  { %s1631_s14 = smov 0   ;;  %s1633_s15 = smov 0   ;;  %s2297_s0 = inlined_call_operand.vmem [shape: f32[2,128,4096], index: 0, kind: input, shape index: {}]   ;;  %s2298_s1 = inlined_call_operand.vmem [shape: f32[1,128], index: 1, kind: input, shape index: {}]   ;;  %s2299_s2 = inlined_call_operand.<no memory space> [shape: f32[1], index: 2, kind: input, shape index: {}]   ;;  %s2300_s3 = inlined_call_operand.vmem [shape: f32[2,1,4096], index: 3, kind: output, shape index: {}]  }
   0x1   :  { %8 = sst [smem:[#allocation2]] %s2299_s2  ;;  %s1635_s16 = smov 0  }
   0x2 LB: > { %s26_s2 = sadd.s32 1, %s1602_s15  ;;  %p1552_p0 = scmp.ge.s32.totalorder %s1606_s16, 1  ;;  %s1606_s16 = sphi %s1635_s16, %s14_s16   ;;  %s1602_s15 = sphi %s1633_s15, %s2302_s15   ;;  %s1598_s14 = sphi %s1631_s14, %s2301_s14  }
   0x3   : > { %p28_p1 = scmp.ge.s32.totalorder %s26_s2, 2  ;;  %p159_p2 = scmp.lt.s32.totalorder %s1606_s16, 3 }
   0x5   : > { %s2304_s2 = smov (%p28_p1, %s26_s2), 0  ;;  %p160_p3 = pnand %p1552_p0, %p159_p2 }
   0x6   : > { %p191_p4 = scmp.lt.s32.totalorder (!%p160_p3), %s1598_s14, 1  ;;  %s2028_s23 = sld [smem:[#allocation2]] (!%p160_p3) }
   0x7   : > { %163 = sbr.rel (%p160_p3) target bundleno = 424 (0x1a8), region = 32 }
   0xc   : > { %s2306_s14 = smov (!%p191_p4, %s1598_s14), 1  ;;  %vm1424_vm0 = vcmask 1040384   ;;  %vm1426_vm1 = vcmask 1042434   ;;  %vm1428_vm2 = vcmask 1041408   ;;  %vm1432_vm3 = vcmask 1046534  }
   0xd   : > { %s1558_s17 = sshll.u32 %s2306_s14, 12  ;;  %s1555_s26 = sshll.u32 %s2306_s14, 5  ;;  %vm1430_vm4 = vcmask 1044484   ;;  %vm1434_vm5 = vcmask 1045508   ;;  %vm1436_vm6 = vcmask 1043456  }
   0xe   : > { %s1655_s20 = scalar_lea.vmem %s2297_s0, %s1558_s17  ;;  %s2098_s29 = scalar_lea.vmem %s2300_s3, %s1555_s26 }
   0xf   : > { %v692_v0 = vld [vmem:[%s1655_s20 + $0xf10] sm:$0xff]  ;;  %v693_v1 = vld [vmem:[%s1655_s20 + $0xf18] sm:$0xff]  ;;  %v690_v6 = vld [vmem:[%s1655_s20 + $0xf00] sm:$0xff] }
  0x10   : > { %v660_v2 = vld [vmem:[%s1655_s20 + $0xe10] sm:$0xff]  ;;  %764 = vmatpush.msra.mxu2 %v692_v0  ;;  %784 = vmatpush.msra.mxu3 %v693_v1  ;;  %v661_v3 = vld [vmem:[%s1655_s20 + $0xe18] sm:$0xff]  ;;  %v691_v7 = vld [vmem:[%s1655_s20 + $0xf08] sm:$0xff] }
  0x11   : > { %v628_v4 = vld [vmem:[%s1655_s20 + $0xd10] sm:$0xff]  ;;  %v629_v5 = vld [vmem:[%s1655_s20 + $0xd18] sm:$0xff]  ;;  %v658_v8 = vld [vmem:[%s1655_s20 + $0xe00] sm:$0xff]  ;;  %724 = vmatpush.msra.mxu0 %v690_v6  ;;  %744 = vmatpush.msra.mxu1 %v691_v7 }
  0x12   : > { %765 = vmatpush.msra.mxu2 %v660_v2  ;;  %785 = vmatpush.msra.mxu3 %v661_v3  ;;  %v659_v9 = vld [vmem:[%s1655_s20 + $0xe08] sm:$0xff]  ;;  %v596_v10 = vld [vmem:[%s1655_s20 + $0xc10] sm:$0xff]  ;;  %v597_v11 = vld [vmem:[%s1655_s20 + $0xc18] sm:$0xff] }
  0x13   : > { %v626_v12 = vld [vmem:[%s1655_s20 + $0xd00] sm:$0xff]  ;;  %v627_v13 = vld [vmem:[%s1655_s20 + $0xd08] sm:$0xff]  ;;  %725 = vmatpush.msra.mxu0 %v658_v8  ;;  %745 = vmatpush.msra.mxu1 %v659_v9  ;;  %v564_v14 = vld [vmem:[%s1655_s20 + $0xb10] sm:$0xff] }
  0x14   : > { %766 = vmatpush.msra.mxu2 %v628_v4  ;;  %786 = vmatpush.msra.mxu3 %v629_v5  ;;  %v565_v15 = vld [vmem:[%s1655_s20 + $0xb18] sm:$0xff]  ;;  %v594_v16 = vld [vmem:[%s1655_s20 + $0xc00] sm:$0xff]  ;;  %v595_v17 = vld [vmem:[%s1655_s20 + $0xc08] sm:$0xff] }
  0x15   : > { %726 = vmatpush.msra.mxu0 %v626_v12  ;;  %746 = vmatpush.msra.mxu1 %v627_v13  ;;  %v532_v18 = vld [vmem:[%s1655_s20 + $0xa10] sm:$0xff]  ;;  %v533_v19 = vld [vmem:[%s1655_s20 + $0xa18] sm:$0xff]  ;;  %v562_v20 = vld [vmem:[%s1655_s20 + $0xb00] sm:$0xff] }
  0x16   : > { %767 = vmatpush.msra.mxu2 %v596_v10  ;;  %787 = vmatpush.msra.mxu3 %v597_v11  ;;  %v563_v21 = vld [vmem:[%s1655_s20 + $0xb08] sm:$0xff]  ;;  %v500_v22 = vld [vmem:[%s1655_s20 + $0x910] sm:$0xff]  ;;  %v501_v23 = vld [vmem:[%s1655_s20 + $0x918] sm:$0xff] }
  0x17   : > { %727 = vmatpush.msra.mxu0 %v594_v16  ;;  %747 = vmatpush.msra.mxu1 %v595_v17  ;;  %v530_v24 = vld [vmem:[%s1655_s20 + $0xa00] sm:$0xff]  ;;  %v531_v25 = vld [vmem:[%s1655_s20 + $0xa08] sm:$0xff]  ;;  %v468_v26 = vld [vmem:[%s1655_s20 + $0x810] sm:$0xff] }
  0x18   : > { %768 = vmatpush.msra.mxu2 %v564_v14  ;;  %788 = vmatpush.msra.mxu3 %v565_v15  ;;  %v469_v27 = vld [vmem:[%s1655_s20 + $0x818] sm:$0xff]  ;;  %v498_v28 = vld [vmem:[%s1655_s20 + $0x900] sm:$0xff]  ;;  %v499_v29 = vld [vmem:[%s1655_s20 + $0x908] sm:$0xff] }
  0x19   : > { %728 = vmatpush.msra.mxu0 %v562_v20  ;;  %748 = vmatpush.msra.mxu1 %v563_v21  ;;  %v436_v30 = vld [vmem:[%s1655_s20 + $0x710] sm:$0xff]  ;;  %v437_v31 = vld [vmem:[%s1655_s20 + $0x718] sm:$0xff]  ;;  %v466_v32 = vld [vmem:[%s1655_s20 + $0x800] sm:$0xff] }
  0x1a   : > { %769 = vmatpush.msra.mxu2 %v532_v18  ;;  %789 = vmatpush.msra.mxu3 %v533_v19  ;;  %v467_v33 = vld [vmem:[%s1655_s20 + $0x808] sm:$0xff]  ;;  %v404_v34 = vld [vmem:[%s1655_s20 + $0x610] sm:$0xff]  ;;  %v405_v35 = vld [vmem:[%s1655_s20 + $0x618] sm:$0xff] }
  0x1b   : > { %729 = vmatpush.msra.mxu0 %v530_v24  ;;  %749 = vmatpush.msra.mxu1 %v531_v25  ;;  %v434_v36 = vld [vmem:[%s1655_s20 + $0x700] sm:$0xff]  ;;  %v435_v37 = vld [vmem:[%s1655_s20 + $0x708] sm:$0xff]  ;;  %v372_v38 = vld [vmem:[%s1655_s20 + $0x510] sm:$0xff] }
  0x1c   : > { %770 = vmatpush.msra.mxu2 %v500_v22  ;;  %790 = vmatpush.msra.mxu3 %v501_v23  ;;  %v373_v39 = vld [vmem:[%s1655_s20 + $0x518] sm:$0xff]  ;;  %v402_v40 = vld [vmem:[%s1655_s20 + $0x600] sm:$0xff]  ;;  %v403_v41 = vld [vmem:[%s1655_s20 + $0x608] sm:$0xff] }
  0x1d   : > { %730 = vmatpush.msra.mxu0 %v498_v28  ;;  %750 = vmatpush.msra.mxu1 %v499_v29  ;;  %v340_v42 = vld [vmem:[%s1655_s20 + $0x410] sm:$0xff]  ;;  %v341_v43 = vld [vmem:[%s1655_s20 + $0x418] sm:$0xff]  ;;  %v370_v44 = vld [vmem:[%s1655_s20 + $0x500] sm:$0xff] }
  0x1e   : > { %771 = vmatpush.msra.mxu2 %v468_v26  ;;  %791 = vmatpush.msra.mxu3 %v469_v27  ;;  %v371_v45 = vld [vmem:[%s1655_s20 + $0x508] sm:$0xff]  ;;  %v308_v46 = vld [vmem:[%s1655_s20 + $0x310] sm:$0xff]  ;;  %v309_v47 = vld [vmem:[%s1655_s20 + $0x318] sm:$0xff] }
  0x1f   : > { %731 = vmatpush.msra.mxu0 %v466_v32  ;;  %751 = vmatpush.msra.mxu1 %v467_v33  ;;  %v338_v48 = vld [vmem:[%s1655_s20 + $0x400] sm:$0xff]  ;;  %v339_v49 = vld [vmem:[%s1655_s20 + $0x408] sm:$0xff]  ;;  %v276_v50 = vld [vmem:[%s1655_s20 + $0x210] sm:$0xff] }
  0x20   : > { %772 = vmatpush.msra.mxu2 %v436_v30  ;;  %792 = vmatpush.msra.mxu3 %v437_v31  ;;  %v277_v51 = vld [vmem:[%s1655_s20 + $0x218] sm:$0xff]  ;;  %v306_v52 = vld [vmem:[%s1655_s20 + $0x300] sm:$0xff]  ;;  %v307_v53 = vld [vmem:[%s1655_s20 + $0x308] sm:$0xff] }
  0x21   : > { %732 = vmatpush.msra.mxu0 %v434_v36  ;;  %752 = vmatpush.msra.mxu1 %v435_v37  ;;  %v244_v54 = vld [vmem:[%s1655_s20 + $0x110] sm:$0xff]  ;;  %v245_v55 = vld [vmem:[%s1655_s20 + $0x118] sm:$0xff]  ;;  %v274_v56 = vld [vmem:[%s1655_s20 + $0x200] sm:$0xff] }
  0x22   : > { %773 = vmatpush.msra.mxu2 %v404_v34  ;;  %793 = vmatpush.msra.mxu3 %v405_v35  ;;  %v275_v57 = vld [vmem:[%s1655_s20 + $0x208] sm:$0xff]  ;;  %v212_v58 = vld [vmem:[%s1655_s20 + $0x10] sm:$0xff]  ;;  %v213_v59 = vld [vmem:[%s1655_s20 + $0x18] sm:$0xff] }
  0x23   : > { %733 = vmatpush.msra.mxu0 %v402_v40  ;;  %753 = vmatpush.msra.mxu1 %v403_v41  ;;  %v696_v60 = vld [vmem:[%s1655_s20 + $0xf30] sm:$0xff]  ;;  %v697_v61 = vld [vmem:[%s1655_s20 + $0xf38] sm:$0xff]  ;;  %v242_v62 = vld [vmem:[%s1655_s20 + $0x100] sm:$0xff] }
  0x24   : > { %774 = vmatpush.msra.mxu2 %v372_v38  ;;  %794 = vmatpush.msra.mxu3 %v373_v39  ;;  %v243_v63 = vld [vmem:[%s1655_s20 + $0x108] sm:$0xff]  ;;  %v664_v0 = vld [vmem:[%s1655_s20 + $0xe30] sm:$0xff]  ;;  %v665_v1 = vld [vmem:[%s1655_s20 + $0xe38] sm:$0xff] }
  0x25   : > { %734 = vmatpush.msra.mxu0 %v370_v44  ;;  %754 = vmatpush.msra.mxu1 %v371_v45  ;;  %v210_v2 = vld [vmem:[%s1655_s20] sm:$0xff]  ;;  %v211_v3 = vld [vmem:[%s1655_s20 + $0x8] sm:$0xff]  ;;  %v632_v4 = vld [vmem:[%s1655_s20 + $0xd30] sm:$0xff] }
  0x26   : > { %775 = vmatpush.msra.mxu2 %v340_v42  ;;  %795 = vmatpush.msra.mxu3 %v341_v43  ;;  %v633_v5 = vld [vmem:[%s1655_s20 + $0xd38] sm:$0xff]  ;;  %v694_v6 = vld [vmem:[%s1655_s20 + $0xf20] sm:$0xff]  ;;  %v695_v7 = vld [vmem:[%s1655_s20 + $0xf28] sm:$0xff] }
  0x27   : > { %735 = vmatpush.msra.mxu0 %v338_v48  ;;  %755 = vmatpush.msra.mxu1 %v339_v49  ;;  %v600_v8 = vld [vmem:[%s1655_s20 + $0xc30] sm:$0xff]  ;;  %v601_v9 = vld [vmem:[%s1655_s20 + $0xc38] sm:$0xff]  ;;  %v662_v10 = vld [vmem:[%s1655_s20 + $0xe20] sm:$0xff] }
  0x28   : > { %776 = vmatpush.msra.mxu2 %v308_v46  ;;  %796 = vmatpush.msra.mxu3 %v309_v47  ;;  %v663_v11 = vld [vmem:[%s1655_s20 + $0xe28] sm:$0xff]  ;;  %v568_v12 = vld [vmem:[%s1655_s20 + $0xb30] sm:$0xff]  ;;  %v569_v13 = vld [vmem:[%s1655_s20 + $0xb38] sm:$0xff] }
  0x29   : > { %736 = vmatpush.msra.mxu0 %v306_v52  ;;  %756 = vmatpush.msra.mxu1 %v307_v53  ;;  %v630_v14 = vld [vmem:[%s1655_s20 + $0xd20] sm:$0xff]  ;;  %v631_v15 = vld [vmem:[%s1655_s20 + $0xd28] sm:$0xff]  ;;  %v536_v16 = vld [vmem:[%s1655_s20 + $0xa30] sm:$0xff] }
  0x2a   : > { %777 = vmatpush.msra.mxu2 %v276_v50  ;;  %797 = vmatpush.msra.mxu3 %v277_v51  ;;  %v537_v17 = vld [vmem:[%s1655_s20 + $0xa38] sm:$0xff]  ;;  %v598_v18 = vld [vmem:[%s1655_s20 + $0xc20] sm:$0xff]  ;;  %v599_v19 = vld [vmem:[%s1655_s20 + $0xc28] sm:$0xff] }
  0x2b   : > { %737 = vmatpush.msra.mxu0 %v274_v56  ;;  %757 = vmatpush.msra.mxu1 %v275_v57  ;;  %v504_v20 = vld [vmem:[%s1655_s20 + $0x930] sm:$0xff]  ;;  %v505_v21 = vld [vmem:[%s1655_s20 + $0x938] sm:$0xff]  ;;  %v566_v22 = vld [vmem:[%s1655_s20 + $0xb20] sm:$0xff] }
  0x2c   : > { %778 = vmatpush.msra.mxu2 %v244_v54  ;;  %798 = vmatpush.msra.mxu3 %v245_v55  ;;  %v567_v23 = vld [vmem:[%s1655_s20 + $0xb28] sm:$0xff]  ;;  %v472_v24 = vld [vmem:[%s1655_s20 + $0x830] sm:$0xff]  ;;  %v473_v25 = vld [vmem:[%s1655_s20 + $0x838] sm:$0xff] }
  0x2d   : > { %738 = vmatpush.msra.mxu0 %v242_v62  ;;  %758 = vmatpush.msra.mxu1 %v243_v63  ;;  %v534_v26 = vld [vmem:[%s1655_s20 + $0xa20] sm:$0xff]  ;;  %v535_v27 = vld [vmem:[%s1655_s20 + $0xa28] sm:$0xff]  ;;  %v440_v28 = vld [vmem:[%s1655_s20 + $0x730] sm:$0xff] }
  0x2e   : > { %779 = vmatpush.msra.mxu2 %v212_v58  ;;  %799 = vmatpush.msra.mxu3 %v213_v59  ;;  %v441_v29 = vld [vmem:[%s1655_s20 + $0x738] sm:$0xff]  ;;  %v502_v30 = vld [vmem:[%s1655_s20 + $0x920] sm:$0xff]  ;;  %v503_v31 = vld [vmem:[%s1655_s20 + $0x928] sm:$0xff] }
  0x2f   : > { %739 = vmatpush.msra.mxu0 %v210_v2  ;;  %759 = vmatpush.msra.mxu1 %v211_v3  ;;  %v408_v32 = vld [vmem:[%s1655_s20 + $0x630] sm:$0xff]  ;;  %v409_v33 = vld [vmem:[%s1655_s20 + $0x638] sm:$0xff]  ;;  %v470_v34 = vld [vmem:[%s1655_s20 + $0x820] sm:$0xff] }
  0x30   : > { %844 = vmatpush.msrb.mxu2 %v696_v60  ;;  %864 = vmatpush.msrb.mxu3 %v697_v61  ;;  %v471_v35 = vld [vmem:[%s1655_s20 + $0x828] sm:$0xff]  ;;  %v376_v36 = vld [vmem:[%s1655_s20 + $0x530] sm:$0xff]  ;;  %v377_v37 = vld [vmem:[%s1655_s20 + $0x538] sm:$0xff] }
  0x31   : > { %804 = vmatpush.msrb.mxu0 %v694_v6  ;;  %824 = vmatpush.msrb.mxu1 %v695_v7  ;;  %v438_v38 = vld [vmem:[%s1655_s20 + $0x720] sm:$0xff]  ;;  %v439_v39 = vld [vmem:[%s1655_s20 + $0x728] sm:$0xff]  ;;  %v344_v40 = vld [vmem:[%s1655_s20 + $0x430] sm:$0xff] }
  0x32   : > { %845 = vmatpush.msrb.mxu2 %v664_v0  ;;  %865 = vmatpush.msrb.mxu3 %v665_v1  ;;  %v345_v41 = vld [vmem:[%s1655_s20 + $0x438] sm:$0xff]  ;;  %v1766_v42 = vld [vmem:[%s2298_s1] sm:$0x1]  ;;  %v407_v44 = vld [vmem:[%s1655_s20 + $0x628] sm:$0xff] }
  0x33   : > { %805 = vmatpush.msrb.mxu0 %v662_v10  ;;  %825 = vmatpush.msrb.mxu1 %v663_v11  ;;  %v406_v43 = vld [vmem:[%s1655_s20 + $0x620] sm:$0xff]  ;;  %v312_v45 = vld [vmem:[%s1655_s20 + $0x330] sm:$0xff]  ;;  %v313_v46 = vld [vmem:[%s1655_s20 + $0x338] sm:$0xff] }
  0x34   : > { %846 = vmatpush.msrb.mxu2 %v632_v4  ;;  %866 = vmatpush.msrb.mxu3 %v633_v5  ;;  %v374_v47 = vld [vmem:[%s1655_s20 + $0x520] sm:$0xff]  ;;  %v375_v48 = vld [vmem:[%s1655_s20 + $0x528] sm:$0xff]  ;;  %v280_v49 = vld [vmem:[%s1655_s20 + $0x230] sm:$0xff] }
  0x35   : > { %806 = vmatpush.msrb.mxu0 %v630_v14  ;;  %826 = vmatpush.msrb.mxu1 %v631_v15  ;;  %v281_v50 = vld [vmem:[%s1655_s20 + $0x238] sm:$0xff]  ;;  %v342_v51 = vld [vmem:[%s1655_s20 + $0x420] sm:$0xff]  ;;  %v343_v52 = vld [vmem:[%s1655_s20 + $0x428] sm:$0xff] }
  0x36   : > { %847 = vmatpush.msrb.mxu2 %v600_v8  ;;  %867 = vmatpush.msrb.mxu3 %v601_v9  ;;  %v248_v53 = vld [vmem:[%s1655_s20 + $0x130] sm:$0xff]  ;;  %v249_v54 = vld [vmem:[%s1655_s20 + $0x138] sm:$0xff]  ;;  %v310_v55 = vld [vmem:[%s1655_s20 + $0x320] sm:$0xff] }
  0x37   : > { %807 = vmatpush.msrb.mxu0 %v598_v18  ;;  %827 = vmatpush.msrb.mxu1 %v599_v19  ;;  %v311_v56 = vld [vmem:[%s1655_s20 + $0x328] sm:$0xff]  ;;  %v216_v57 = vld [vmem:[%s1655_s20 + $0x30] sm:$0xff]  ;;  %v217_v58 = vld [vmem:[%s1655_s20 + $0x38] sm:$0xff] }
  0x38   : > { %848 = vmatpush.msrb.mxu2 %v568_v12  ;;  %868 = vmatpush.msrb.mxu3 %v569_v13  ;;  %v700_v59 = vld [vmem:[%s1655_s20 + $0xf50] sm:$0xff]  ;;  %v701_v60 = vld [vmem:[%s1655_s20 + $0xf58] sm:$0xff]  ;;  %v278_v61 = vld [vmem:[%s1655_s20 + $0x220] sm:$0xff] }
  0x39   : > { %808 = vmatpush.msrb.mxu0 %v566_v22  ;;  %828 = vmatpush.msrb.mxu1 %v567_v23  ;;  %v279_v62 = vld [vmem:[%s1655_s20 + $0x228] sm:$0xff]  ;;  %v668_v63 = vld [vmem:[%s1655_s20 + $0xe50] sm:$0xff]  ;;  %v669_v0 = vld [vmem:[%s1655_s20 + $0xe58] sm:$0xff] }
  0x3a   : > { %849 = vmatpush.msrb.mxu2 %v536_v16  ;;  %869 = vmatpush.msrb.mxu3 %v537_v17  ;;  %v246_v1 = vld [vmem:[%s1655_s20 + $0x120] sm:$0xff]  ;;  %v247_v2 = vld [vmem:[%s1655_s20 + $0x128] sm:$0xff]  ;;  %v636_v3 = vld [vmem:[%s1655_s20 + $0xd50] sm:$0xff] }
  0x3b   : > { %809 = vmatpush.msrb.mxu0 %v534_v26  ;;  %829 = vmatpush.msrb.mxu1 %v535_v27  ;;  %v637_v4 = vld [vmem:[%s1655_s20 + $0xd58] sm:$0xff]  ;;  %v214_v5 = vld [vmem:[%s1655_s20 + $0x20] sm:$0xff]  ;;  %v215_v6 = vld [vmem:[%s1655_s20 + $0x28] sm:$0xff] }
  0x3c   : > { %850 = vmatpush.msrb.mxu2 %v504_v20  ;;  %870 = vmatpush.msrb.mxu3 %v505_v21  ;;  %v698_v7 = vld [vmem:[%s1655_s20 + $0xf40] sm:$0xff]  ;;  %v699_v8 = vld [vmem:[%s1655_s20 + $0xf48] sm:$0xff]  ;;  %v604_v9 = vld [vmem:[%s1655_s20 + $0xc50] sm:$0xff] }
  0x3d   : > { %810 = vmatpush.msrb.mxu0 %v502_v30  ;;  %830 = vmatpush.msrb.mxu1 %v503_v31  ;;  %v605_v10 = vld [vmem:[%s1655_s20 + $0xc58] sm:$0xff]  ;;  %v666_v11 = vld [vmem:[%s1655_s20 + $0xe40] sm:$0xff]  ;;  %v667_v12 = vld [vmem:[%s1655_s20 + $0xe48] sm:$0xff] }
  0x3e   : > { %851 = vmatpush.msrb.mxu2 %v472_v24  ;;  %871 = vmatpush.msrb.mxu3 %v473_v25  ;;  %v572_v13 = vld [vmem:[%s1655_s20 + $0xb50] sm:$0xff]  ;;  %v573_v14 = vld [vmem:[%s1655_s20 + $0xb58] sm:$0xff]  ;;  %v634_v15 = vld [vmem:[%s1655_s20 + $0xd40] sm:$0xff] }
  0x3f   : > { %811 = vmatpush.msrb.mxu0 %v470_v34  ;;  %831 = vmatpush.msrb.mxu1 %v471_v35  ;;  %v635_v16 = vld [vmem:[%s1655_s20 + $0xd48] sm:$0xff]  ;;  %v540_v17 = vld [vmem:[%s1655_s20 + $0xa50] sm:$0xff]  ;;  %v541_v18 = vld [vmem:[%s1655_s20 + $0xa58] sm:$0xff] }
  0x40   : > { %852 = vmatpush.msrb.mxu2 %v440_v28  ;;  %872 = vmatpush.msrb.mxu3 %v441_v29  ;;  %v602_v19 = vld [vmem:[%s1655_s20 + $0xc40] sm:$0xff]  ;;  %v603_v20 = vld [vmem:[%s1655_s20 + $0xc48] sm:$0xff]  ;;  %v508_v21 = vld [vmem:[%s1655_s20 + $0x950] sm:$0xff] }
  0x41   : > { %812 = vmatpush.msrb.mxu0 %v438_v38  ;;  %832 = vmatpush.msrb.mxu1 %v439_v39  ;;  %v509_v22 = vld [vmem:[%s1655_s20 + $0x958] sm:$0xff]  ;;  %v570_v23 = vld [vmem:[%s1655_s20 + $0xb40] sm:$0xff]  ;;  %v571_v24 = vld [vmem:[%s1655_s20 + $0xb48] sm:$0xff] }
  0x42   : > { %853 = vmatpush.msrb.mxu2 %v408_v32  ;;  %873 = vmatpush.msrb.mxu3 %v409_v33  ;;  %v476_v25 = vld [vmem:[%s1655_s20 + $0x850] sm:$0xff]  ;;  %v477_v26 = vld [vmem:[%s1655_s20 + $0x858] sm:$0xff]  ;;  %v538_v27 = vld [vmem:[%s1655_s20 + $0xa40] sm:$0xff] }
  0x43   : > { %780 = vmatmul.f32.vlgmr.msra.gmra.mxu2 %v1766_v42  ;;  %800 = vmatmul.f32.vlgmr.msra.gmra.mxu3 %v1766_v42  ;;  %v539_v28 = vld [vmem:[%s1655_s20 + $0xa48] sm:$0xff]  ;;  %v444_v29 = vld [vmem:[%s1655_s20 + $0x750] sm:$0xff]  ;;  %v445_v30 = vld [vmem:[%s1655_s20 + $0x758] sm:$0xff] }
  0x44   : > { %854 = vmatpush.msrb.mxu2 %v376_v36  ;;  %874 = vmatpush.msrb.mxu3 %v377_v37  ;;  %v506_v31 = vld [vmem:[%s1655_s20 + $0x940] sm:$0xff]  ;;  %v507_v32 = vld [vmem:[%s1655_s20 + $0x948] sm:$0xff]  ;;  %v412_v33 = vld [vmem:[%s1655_s20 + $0x650] sm:$0xff] }
  0x45   : > { %813 = vmatpush.msrb.mxu0 %v406_v43  ;;  %833 = vmatpush.msrb.mxu1 %v407_v44  ;;  %v413_v34 = vld [vmem:[%s1655_s20 + $0x658] sm:$0xff]  ;;  %v474_v35 = vld [vmem:[%s1655_s20 + $0x840] sm:$0xff]  ;;  %v475_v36 = vld [vmem:[%s1655_s20 + $0x848] sm:$0xff] }
  0x46   : > { %855 = vmatpush.msrb.mxu2 %v344_v40  ;;  %875 = vmatpush.msrb.mxu3 %v345_v41  ;;  %v380_v37 = vld [vmem:[%s1655_s20 + $0x550] sm:$0xff]  ;;  %v381_v38 = vld [vmem:[%s1655_s20 + $0x558] sm:$0xff]  ;;  %v442_v39 = vld [vmem:[%s1655_s20 + $0x740] sm:$0xff] }
  0x47   : > { %814 = vmatpush.msrb.mxu0 %v374_v47  ;;  %834 = vmatpush.msrb.mxu1 %v375_v48  ;;  %v443_v40 = vld [vmem:[%s1655_s20 + $0x748] sm:$0xff]  ;;  %v348_v41 = vld [vmem:[%s1655_s20 + $0x450] sm:$0xff]  ;;  %v349_v43 = vld [vmem:[%s1655_s20 + $0x458] sm:$0xff] }
  0x48   : > { %856 = vmatpush.msrb.mxu2 %v312_v45  ;;  %876 = vmatpush.msrb.mxu3 %v313_v46  ;;  %v410_v44 = vld [vmem:[%s1655_s20 + $0x640] sm:$0xff]  ;;  %v411_v45 = vld [vmem:[%s1655_s20 + $0x648] sm:$0xff]  ;;  %v316_v46 = vld [vmem:[%s1655_s20 + $0x350] sm:$0xff] }
  0x49   : > { %815 = vmatpush.msrb.mxu0 %v342_v51  ;;  %835 = vmatpush.msrb.mxu1 %v343_v52  ;;  %v317_v47 = vld [vmem:[%s1655_s20 + $0x358] sm:$0xff]  ;;  %v378_v48 = vld [vmem:[%s1655_s20 + $0x540] sm:$0xff] }
  0x4a   : > { %857 = vmatpush.msrb.mxu2 %v280_v49  ;;  %877 = vmatpush.msrb.mxu3 %v281_v50  ;;  %v379_v49 = vld [vmem:[%s1655_s20 + $0x548] sm:$0xff]  ;;  %v284_v50 = vld [vmem:[%s1655_s20 + $0x250] sm:$0xff]  ;;  %v285_v51 = vld [vmem:[%s1655_s20 + $0x258] sm:$0xff] }
  0x4b   : > { %740 = vmatmul.f32.vlgmr.msra.gmra.mxu0 %v1766_v42  ;;  %760 = vmatmul.f32.vlgmr.msra.gmra.mxu1 %v1766_v42  ;;  %v346_v52 = vld [vmem:[%s1655_s20 + $0x440] sm:$0xff] }
  0x4c   : > { %858 = vmatpush.msrb.mxu2 %v248_v53  ;;  %878 = vmatpush.msrb.mxu3 %v249_v54  ;;  %v347_v53 = vld [vmem:[%s1655_s20 + $0x448] sm:$0xff]  ;;  %v252_v54 = vld [vmem:[%s1655_s20 + $0x150] sm:$0xff] }
  0x4d   : > { %816 = vmatpush.msrb.mxu0 %v310_v55  ;;  %836 = vmatpush.msrb.mxu1 %v311_v56  ;;  %v253_v55 = vld [vmem:[%s1655_s20 + $0x158] sm:$0xff]  ;;  %v314_v56 = vld [vmem:[%s1655_s20 + $0x340] sm:$0xff] }
  0x4e   : > { %859 = vmatpush.msrb.mxu2 %v216_v57  ;;  %879 = vmatpush.msrb.mxu3 %v217_v58  ;;  %v315_v57 = vld [vmem:[%s1655_s20 + $0x348] sm:$0xff]  ;;  %v220_v58 = vld [vmem:[%s1655_s20 + $0x50] sm:$0xff] }
  0x4f   : > { %860 = vmatmul.f32.vlgmr.msrb.gmra.mxu2 %v1766_v42  ;;  %880 = vmatmul.f32.vlgmr.msrb.gmra.mxu3 %v1766_v42 }
  0x50   : > { %924 = vmatpush.msra.mxu2 %v700_v59  ;;  %944 = vmatpush.msra.mxu3 %v701_v60  ;;  %v221_v59 = vld [vmem:[%s1655_s20 + $0x58] sm:$0xff]  ;;  %v704_v60 = vld [vmem:[%s1655_s20 + $0xf70] sm:$0xff] }
  0x51   : > { %817 = vmatpush.msrb.mxu0 %v278_v61  ;;  %837 = vmatpush.msrb.mxu1 %v279_v62  ;;  %v705_v61 = vld [vmem:[%s1655_s20 + $0xf78] sm:$0xff]  ;;  %v282_v62 = vld [vmem:[%s1655_s20 + $0x240] sm:$0xff] }
  0x52   : > { %925 = vmatpush.msra.mxu2 %v668_v63  ;;  %945 = vmatpush.msra.mxu3 %v669_v0  ;;  %v283_v63 = vld [vmem:[%s1655_s20 + $0x248] sm:$0xff]  ;;  %v672_v0 = vld [vmem:[%s1655_s20 + $0xe70] sm:$0xff] }
  0x53   : > { %818 = vmatpush.msrb.mxu0 %v246_v1  ;;  %838 = vmatpush.msrb.mxu1 %v247_v2  ;;  %v673_v1 = vld [vmem:[%s1655_s20 + $0xe78] sm:$0xff]  ;;  %v250_v2 = vld [vmem:[%s1655_s20 + $0x140] sm:$0xff] }
  0x54   : > { %926 = vmatpush.msra.mxu2 %v636_v3  ;;  %946 = vmatpush.msra.mxu3 %v637_v4  ;;  %v251_v3 = vld [vmem:[%s1655_s20 + $0x148] sm:$0xff]  ;;  %v640_v4 = vld [vmem:[%s1655_s20 + $0xd70] sm:$0xff] }
  0x55   : > { %819 = vmatpush.msrb.mxu0 %v214_v5  ;;  %839 = vmatpush.msrb.mxu1 %v215_v6  ;;  %v641_v5 = vld [vmem:[%s1655_s20 + $0xd78] sm:$0xff]  ;;  %v218_v6 = vld [vmem:[%s1655_s20 + $0x40] sm:$0xff] }
  0x56   : > { %820 = vmatmul.f32.vlgmr.msrb.gmra.mxu0 %v1766_v42  ;;  %840 = vmatmul.f32.vlgmr.msrb.gmra.mxu1 %v1766_v42 }
  0x57   : > { %884 = vmatpush.msra.mxu0 %v698_v7  ;;  %904 = vmatpush.msra.mxu1 %v699_v8  ;;  %v219_v7 = vld [vmem:[%s1655_s20 + $0x48] sm:$0xff]  ;;  %v702_v8 = vld [vmem:[%s1655_s20 + $0xf60] sm:$0xff] }
  0x58   : > { %927 = vmatpush.msra.mxu2 %v604_v9  ;;  %947 = vmatpush.msra.mxu3 %v605_v10  ;;  %v703_v9 = vld [vmem:[%s1655_s20 + $0xf68] sm:$0xff]  ;;  %v608_v10 = vld [vmem:[%s1655_s20 + $0xc70] sm:$0xff] }
  0x59   : > { %885 = vmatpush.msra.mxu0 %v666_v11  ;;  %905 = vmatpush.msra.mxu1 %v667_v12  ;;  %v609_v11 = vld [vmem:[%s1655_s20 + $0xc78] sm:$0xff]  ;;  %v670_v12 = vld [vmem:[%s1655_s20 + $0xe60] sm:$0xff] }
  0x5a   : > { %928 = vmatpush.msra.mxu2 %v572_v13  ;;  %948 = vmatpush.msra.mxu3 %v573_v14  ;;  %v671_v13 = vld [vmem:[%s1655_s20 + $0xe68] sm:$0xff]  ;;  %v576_v14 = vld [vmem:[%s1655_s20 + $0xb70] sm:$0xff] }
  0x5b   : > { %886 = vmatpush.msra.mxu0 %v634_v15  ;;  %906 = vmatpush.msra.mxu1 %v635_v16  ;;  %v577_v15 = vld [vmem:[%s1655_s20 + $0xb78] sm:$0xff]  ;;  %v638_v16 = vld [vmem:[%s1655_s20 + $0xd60] sm:$0xff] }
  0x5c   : > { %929 = vmatpush.msra.mxu2 %v540_v17  ;;  %949 = vmatpush.msra.mxu3 %v541_v18  ;;  %v639_v17 = vld [vmem:[%s1655_s20 + $0xd68] sm:$0xff]  ;;  %v544_v18 = vld [vmem:[%s1655_s20 + $0xa70] sm:$0xff] }
  0x5d   : > { %887 = vmatpush.msra.mxu0 %v602_v19  ;;  %907 = vmatpush.msra.mxu1 %v603_v20  ;;  %v545_v19 = vld [vmem:[%s1655_s20 + $0xa78] sm:$0xff]  ;;  %v606_v20 = vld [vmem:[%s1655_s20 + $0xc60] sm:$0xff] }
  0x5e   : > { %930 = vmatpush.msra.mxu2 %v508_v21  ;;  %950 = vmatpush.msra.mxu3 %v509_v22  ;;  %v607_v21 = vld [vmem:[%s1655_s20 + $0xc68] sm:$0xff]  ;;  %v512_v22 = vld [vmem:[%s1655_s20 + $0x970] sm:$0xff] }
  0x5f   : > { %888 = vmatpush.msra.mxu0 %v570_v23  ;;  %908 = vmatpush.msra.mxu1 %v571_v24  ;;  %v513_v23 = vld [vmem:[%s1655_s20 + $0x978] sm:$0xff]  ;;  %v574_v24 = vld [vmem:[%s1655_s20 + $0xb60] sm:$0xff] }
  0x60   : > { %931 = vmatpush.msra.mxu2 %v476_v25  ;;  %951 = vmatpush.msra.mxu3 %v477_v26  ;;  %v575_v25 = vld [vmem:[%s1655_s20 + $0xb68] sm:$0xff]  ;;  %v480_v26 = vld [vmem:[%s1655_s20 + $0x870] sm:$0xff] }
  0x61   : > { %889 = vmatpush.msra.mxu0 %v538_v27  ;;  %909 = vmatpush.msra.mxu1 %v539_v28  ;;  %v481_v27 = vld [vmem:[%s1655_s20 + $0x878] sm:$0xff]  ;;  %v542_v28 = vld [vmem:[%s1655_s20 + $0xa60] sm:$0xff] }
  0x62   : > { %932 = vmatpush.msra.mxu2 %v444_v29  ;;  %952 = vmatpush.msra.mxu3 %v445_v30  ;;  %v543_v29 = vld [vmem:[%s1655_s20 + $0xa68] sm:$0xff]  ;;  %v448_v30 = vld [vmem:[%s1655_s20 + $0x770] sm:$0xff] }
  0x63   : > { %890 = vmatpush.msra.mxu0 %v506_v31  ;;  %910 = vmatpush.msra.mxu1 %v507_v32  ;;  %v449_v31 = vld [vmem:[%s1655_s20 + $0x778] sm:$0xff]  ;;  %v510_v32 = vld [vmem:[%s1655_s20 + $0x960] sm:$0xff] }
  0x64   : > { %933 = vmatpush.msra.mxu2 %v412_v33  ;;  %953 = vmatpush.msra.mxu3 %v413_v34  ;;  %v511_v33 = vld [vmem:[%s1655_s20 + $0x968] sm:$0xff]  ;;  %v416_v34 = vld [vmem:[%s1655_s20 + $0x670] sm:$0xff] }
  0x65   : > { %891 = vmatpush.msra.mxu0 %v474_v35  ;;  %911 = vmatpush.msra.mxu1 %v475_v36  ;;  %v417_v35 = vld [vmem:[%s1655_s20 + $0x678] sm:$0xff]  ;;  %v478_v36 = vld [vmem:[%s1655_s20 + $0x860] sm:$0xff] }
  0x66   : > { %934 = vmatpush.msra.mxu2 %v380_v37  ;;  %954 = vmatpush.msra.mxu3 %v381_v38  ;;  %v479_v37 = vld [vmem:[%s1655_s20 + $0x868] sm:$0xff]  ;;  %v384_v38 = vld [vmem:[%s1655_s20 + $0x570] sm:$0xff] }
  0x67   : > { %892 = vmatpush.msra.mxu0 %v442_v39  ;;  %912 = vmatpush.msra.mxu1 %v443_v40  ;;  %v385_v39 = vld [vmem:[%s1655_s20 + $0x578] sm:$0xff]  ;;  %v446_v40 = vld [vmem:[%s1655_s20 + $0x760] sm:$0xff] }
  0x68   : > { %935 = vmatpush.msra.mxu2 %v348_v41  ;;  %955 = vmatpush.msra.mxu3 %v349_v43  ;;  %v447_v41 = vld [vmem:[%s1655_s20 + $0x768] sm:$0xff]  ;;  %v352_v43 = vld [vmem:[%s1655_s20 + $0x470] sm:$0xff] }
  0x69   : > { %893 = vmatpush.msra.mxu0 %v410_v44  ;;  %913 = vmatpush.msra.mxu1 %v411_v45  ;;  %v353_v44 = vld [vmem:[%s1655_s20 + $0x478] sm:$0xff]  ;;  %v414_v45 = vld [vmem:[%s1655_s20 + $0x660] sm:$0xff] }
  0x6a   : > { %936 = vmatpush.msra.mxu2 %v316_v46  ;;  %956 = vmatpush.msra.mxu3 %v317_v47  ;;  %v415_v46 = vld [vmem:[%s1655_s20 + $0x668] sm:$0xff]  ;;  %v320_v47 = vld [vmem:[%s1655_s20 + $0x370] sm:$0xff] }
  0x6b   : > { %894 = vmatpush.msra.mxu0 %v378_v48  ;;  %914 = vmatpush.msra.mxu1 %v379_v49  ;;  %v321_v48 = vld [vmem:[%s1655_s20 + $0x378] sm:$0xff]  ;;  %v382_v49 = vld [vmem:[%s1655_s20 + $0x560] sm:$0xff] }
  0x6c   : > { %937 = vmatpush.msra.mxu2 %v284_v50  ;;  %957 = vmatpush.msra.mxu3 %v285_v51  ;;  %v383_v50 = vld [vmem:[%s1655_s20 + $0x568] sm:$0xff]  ;;  %v288_v51 = vld [vmem:[%s1655_s20 + $0x270] sm:$0xff] }
  0x6d   : > { %895 = vmatpush.msra.mxu0 %v346_v52  ;;  %915 = vmatpush.msra.mxu1 %v347_v53  ;;  %v289_v52 = vld [vmem:[%s1655_s20 + $0x278] sm:$0xff]  ;;  %v350_v53 = vld [vmem:[%s1655_s20 + $0x460] sm:$0xff] }
  0x6e   : > { %938 = vmatpush.msra.mxu2 %v252_v54  ;;  %958 = vmatpush.msra.mxu3 %v253_v55  ;;  %v351_v54 = vld [vmem:[%s1655_s20 + $0x468] sm:$0xff]  ;;  %v256_v55 = vld [vmem:[%s1655_s20 + $0x170] sm:$0xff] }
  0x6f   : > { %896 = vmatpush.msra.mxu0 %v314_v56  ;;  %916 = vmatpush.msra.mxu1 %v315_v57  ;;  %v257_v56 = vld [vmem:[%s1655_s20 + $0x178] sm:$0xff]  ;;  %v318_v57 = vld [vmem:[%s1655_s20 + $0x360] sm:$0xff] }
  0x70   : > { %939 = vmatpush.msra.mxu2 %v220_v58  ;;  %959 = vmatpush.msra.mxu3 %v221_v59  ;;  %v319_v58 = vld [vmem:[%s1655_s20 + $0x368] sm:$0xff]  ;;  %v224_v59 = vld [vmem:[%s1655_s20 + $0x70] sm:$0xff] }
  0x71   : > { %897 = vmatpush.msra.mxu0 %v282_v62  ;;  %917 = vmatpush.msra.mxu1 %v283_v63  ;;  %v709_v62 = vld [vmem:[%s1655_s20 + $0xf98] sm:$0xff]  ;;  %v286_v63 = vld [vmem:[%s1655_s20 + $0x260] sm:$0xff] }
  0x72   : > { %1004 = vmatpush.msrb.mxu2 %v704_v60  ;;  %1024 = vmatpush.msrb.mxu3 %v705_v61  ;;  %v225_v60 = vld [vmem:[%s1655_s20 + $0x78] sm:$0xff]  ;;  %v708_v61 = vld [vmem:[%s1655_s20 + $0xf90] sm:$0xff] }
  0x73   : > { %898 = vmatpush.msra.mxu0 %v250_v2  ;;  %918 = vmatpush.msra.mxu1 %v251_v3  ;;  %v677_v2 = vld [vmem:[%s1655_s20 + $0xe98] sm:$0xff]  ;;  %v254_v3 = vld [vmem:[%s1655_s20 + $0x160] sm:$0xff] }
  0x74   : > { %1005 = vmatpush.msrb.mxu2 %v672_v0  ;;  %1025 = vmatpush.msrb.mxu3 %v673_v1  ;;  %v287_v0 = vld [vmem:[%s1655_s20 + $0x268] sm:$0xff]  ;;  %v676_v1 = vld [vmem:[%s1655_s20 + $0xe90] sm:$0xff] }
  0x75   : > { %899 = vmatpush.msra.mxu0 %v218_v6  ;;  %919 = vmatpush.msra.mxu1 %v219_v7  ;;  %v645_v6 = vld [vmem:[%s1655_s20 + $0xd98] sm:$0xff]  ;;  %v222_v7 = vld [vmem:[%s1655_s20 + $0x60] sm:$0xff] }
  0x76   : > { %1006 = vmatpush.msrb.mxu2 %v640_v4  ;;  %1026 = vmatpush.msrb.mxu3 %v641_v5  ;;  %v255_v4 = vld [vmem:[%s1655_s20 + $0x168] sm:$0xff]  ;;  %v644_v5 = vld [vmem:[%s1655_s20 + $0xd90] sm:$0xff] }
  0x77   : > { %964 = vmatpush.msrb.mxu0 %v702_v8  ;;  %984 = vmatpush.msrb.mxu1 %v703_v9  ;;  %v223_v8 = vld [vmem:[%s1655_s20 + $0x68] sm:$0xff]  ;;  %v706_v9 = vld [vmem:[%s1655_s20 + $0xf80] sm:$0xff] }
  0x78   : > { %1007 = vmatpush.msrb.mxu2 %v608_v10  ;;  %1027 = vmatpush.msrb.mxu3 %v609_v11  ;;  %v707_v10 = vld [vmem:[%s1655_s20 + $0xf88] sm:$0xff]  ;;  %v612_v11 = vld [vmem:[%s1655_s20 + $0xc90] sm:$0xff] }
  0x79   : > { %965 = vmatpush.msrb.mxu0 %v670_v12  ;;  %985 = vmatpush.msrb.mxu1 %v671_v13  ;;  %v613_v12 = vld [vmem:[%s1655_s20 + $0xc98] sm:$0xff]  ;;  %v674_v13 = vld [vmem:[%s1655_s20 + $0xe80] sm:$0xff] }
  0x7a   : > { %1008 = vmatpush.msrb.mxu2 %v576_v14  ;;  %1028 = vmatpush.msrb.mxu3 %v577_v15  ;;  %v675_v14 = vld [vmem:[%s1655_s20 + $0xe88] sm:$0xff]  ;;  %v580_v15 = vld [vmem:[%s1655_s20 + $0xb90] sm:$0xff] }
  0x7b   : > { %966 = vmatpush.msrb.mxu0 %v638_v16  ;;  %986 = vmatpush.msrb.mxu1 %v639_v17  ;;  %v581_v16 = vld [vmem:[%s1655_s20 + $0xb98] sm:$0xff]  ;;  %v642_v17 = vld [vmem:[%s1655_s20 + $0xd80] sm:$0xff] }
  0x7c   : > { %1009 = vmatpush.msrb.mxu2 %v544_v18  ;;  %1029 = vmatpush.msrb.mxu3 %v545_v19  ;;  %v643_v18 = vld [vmem:[%s1655_s20 + $0xd88] sm:$0xff]  ;;  %v548_v19 = vld [vmem:[%s1655_s20 + $0xa90] sm:$0xff] }
  0x7d   : > { %967 = vmatpush.msrb.mxu0 %v606_v20  ;;  %987 = vmatpush.msrb.mxu1 %v607_v21  ;;  %v610_v20 = vld [vmem:[%s1655_s20 + $0xc80] sm:$0xff]  ;;  %v611_v21 = vld [vmem:[%s1655_s20 + $0xc88] sm:$0xff] }
  0x7e   : > { %1010 = vmatpush.msrb.mxu2 %v512_v22  ;;  %1030 = vmatpush.msrb.mxu3 %v513_v23  ;;  %v516_v22 = vld [vmem:[%s1655_s20 + $0x990] sm:$0xff]  ;;  %v517_v23 = vld [vmem:[%s1655_s20 + $0x998] sm:$0xff] }
  0x7f   : > { %968 = vmatpush.msrb.mxu0 %v574_v24  ;;  %988 = vmatpush.msrb.mxu1 %v575_v25  ;;  %v578_v24 = vld [vmem:[%s1655_s20 + $0xb80] sm:$0xff]  ;;  %v579_v25 = vld [vmem:[%s1655_s20 + $0xb88] sm:$0xff] }
  0x80   : > { %1011 = vmatpush.msrb.mxu2 %v480_v26  ;;  %1031 = vmatpush.msrb.mxu3 %v481_v27  ;;  %v484_v26 = vld [vmem:[%s1655_s20 + $0x890] sm:$0xff]  ;;  %v485_v27 = vld [vmem:[%s1655_s20 + $0x898] sm:$0xff] }
  0x81   : > { %969 = vmatpush.msrb.mxu0 %v542_v28  ;;  %989 = vmatpush.msrb.mxu1 %v543_v29  ;;  %v546_v28 = vld [vmem:[%s1655_s20 + $0xa80] sm:$0xff]  ;;  %v547_v29 = vld [vmem:[%s1655_s20 + $0xa88] sm:$0xff] }
  0x82   : > { %1012 = vmatpush.msrb.mxu2 %v448_v30  ;;  %1032 = vmatpush.msrb.mxu3 %v449_v31  ;;  %v452_v30 = vld [vmem:[%s1655_s20 + $0x790] sm:$0xff]  ;;  %v453_v31 = vld [vmem:[%s1655_s20 + $0x798] sm:$0xff] }
  0x83   : > { %970 = vmatpush.msrb.mxu0 %v510_v32  ;;  %990 = vmatpush.msrb.mxu1 %v511_v33  ;;  %v514_v32 = vld [vmem:[%s1655_s20 + $0x980] sm:$0xff]  ;;  %v515_v33 = vld [vmem:[%s1655_s20 + $0x988] sm:$0xff] }
  0x84   : > { %1013 = vmatpush.msrb.mxu2 %v416_v34  ;;  %1033 = vmatpush.msrb.mxu3 %v417_v35  ;;  %v420_v34 = vld [vmem:[%s1655_s20 + $0x690] sm:$0xff]  ;;  %v421_v35 = vld [vmem:[%s1655_s20 + $0x698] sm:$0xff] }
  0x85   : > { %971 = vmatpush.msrb.mxu0 %v478_v36  ;;  %991 = vmatpush.msrb.mxu1 %v479_v37  ;;  %v482_v36 = vld [vmem:[%s1655_s20 + $0x880] sm:$0xff]  ;;  %v483_v37 = vld [vmem:[%s1655_s20 + $0x888] sm:$0xff] }
  0x86   : > { %1014 = vmatpush.msrb.mxu2 %v384_v38  ;;  %1034 = vmatpush.msrb.mxu3 %v385_v39  ;;  %v388_v38 = vld [vmem:[%s1655_s20 + $0x590] sm:$0xff]  ;;  %v389_v39 = vld [vmem:[%s1655_s20 + $0x598] sm:$0xff] }
  0x87   : > { %972 = vmatpush.msrb.mxu0 %v446_v40  ;;  %992 = vmatpush.msrb.mxu1 %v447_v41  ;;  %v450_v40 = vld [vmem:[%s1655_s20 + $0x780] sm:$0xff]  ;;  %v451_v41 = vld [vmem:[%s1655_s20 + $0x788] sm:$0xff] }
  0x88   : > { %1015 = vmatpush.msrb.mxu2 %v352_v43  ;;  %1035 = vmatpush.msrb.mxu3 %v353_v44  ;;  %v356_v43 = vld [vmem:[%s1655_s20 + $0x490] sm:$0xff]  ;;  %v357_v44 = vld [vmem:[%s1655_s20 + $0x498] sm:$0xff] }
  0x89   : > { %940 = vmatmul.f32.vlgmr.msra.gmra.mxu2 %v1766_v42  ;;  %960 = vmatmul.f32.vlgmr.msra.gmra.mxu3 %v1766_v42 }
  0x8a   : > { %973 = vmatpush.msrb.mxu0 %v414_v45  ;;  %993 = vmatpush.msrb.mxu1 %v415_v46  ;;  %v418_v45 = vld [vmem:[%s1655_s20 + $0x680] sm:$0xff]  ;;  %v419_v46 = vld [vmem:[%s1655_s20 + $0x688] sm:$0xff] }
  0x8b   : > { %1016 = vmatpush.msrb.mxu2 %v320_v47  ;;  %1036 = vmatpush.msrb.mxu3 %v321_v48  ;;  %v324_v47 = vld [vmem:[%s1655_s20 + $0x390] sm:$0xff]  ;;  %v325_v48 = vld [vmem:[%s1655_s20 + $0x398] sm:$0xff] }
  0x8c   : > { %974 = vmatpush.msrb.mxu0 %v382_v49  ;;  %994 = vmatpush.msrb.mxu1 %v383_v50  ;;  %v386_v49 = vld [vmem:[%s1655_s20 + $0x580] sm:$0xff]  ;;  %v387_v50 = vld [vmem:[%s1655_s20 + $0x588] sm:$0xff] }
  0x8d   : > { %1017 = vmatpush.msrb.mxu2 %v288_v51  ;;  %1037 = vmatpush.msrb.mxu3 %v289_v52  ;;  %v292_v51 = vld [vmem:[%s1655_s20 + $0x290] sm:$0xff]  ;;  %v293_v52 = vld [vmem:[%s1655_s20 + $0x298] sm:$0xff] }
  0x8e   : > { %975 = vmatpush.msrb.mxu0 %v350_v53  ;;  %995 = vmatpush.msrb.mxu1 %v351_v54  ;;  %v354_v53 = vld [vmem:[%s1655_s20 + $0x480] sm:$0xff]  ;;  %v355_v54 = vld [vmem:[%s1655_s20 + $0x488] sm:$0xff] }
  0x8f   : > { %1018 = vmatpush.msrb.mxu2 %v256_v55  ;;  %1038 = vmatpush.msrb.mxu3 %v257_v56  ;;  %v260_v55 = vld [vmem:[%s1655_s20 + $0x190] sm:$0xff]  ;;  %v261_v56 = vld [vmem:[%s1655_s20 + $0x198] sm:$0xff] }
  0x90   : > { %900 = vmatmul.f32.vlgmr.msra.gmra.mxu0 %v1766_v42  ;;  %920 = vmatmul.f32.vlgmr.msra.gmra.mxu1 %v1766_v42 }
  0x91   : > { %976 = vmatpush.msrb.mxu0 %v318_v57  ;;  %996 = vmatpush.msrb.mxu1 %v319_v58  ;;  %v322_v57 = vld [vmem:[%s1655_s20 + $0x380] sm:$0xff]  ;;  %v323_v58 = vld [vmem:[%s1655_s20 + $0x388] sm:$0xff] }
  0x92   : > { %1019 = vmatpush.msrb.mxu2 %v224_v59  ;;  %1039 = vmatpush.msrb.mxu3 %v225_v60  ;;  %v228_v59 = vld [vmem:[%s1655_s20 + $0x90] sm:$0xff]  ;;  %v229_v60 = vld [vmem:[%s1655_s20 + $0x98] sm:$0xff] }
  0x93   : > { %1020 = vmatmul.f32.vlgmr.msrb.gmra.mxu2 %v1766_v42  ;;  %1040 = vmatmul.f32.vlgmr.msrb.gmra.mxu3 %v1766_v42 }
  0x94   : > { %1084 = vmatpush.msra.mxu2 %v708_v61  ;;  %1104 = vmatpush.msra.mxu3 %v709_v62  ;;  %v712_v61 = vld [vmem:[%s1655_s20 + $0xfb0] sm:$0xff]  ;;  %v713_v62 = vld [vmem:[%s1655_s20 + $0xfb8] sm:$0xff] }
  0x95   : > { %977 = vmatpush.msrb.mxu0 %v286_v63  ;;  %997 = vmatpush.msrb.mxu1 %v287_v0  ;;  %v290_v63 = vld [vmem:[%s1655_s20 + $0x280] sm:$0xff]  ;;  %v291_v0 = vld [vmem:[%s1655_s20 + $0x288] sm:$0xff] }
  0x96   : > { %1085 = vmatpush.msra.mxu2 %v676_v1  ;;  %1105 = vmatpush.msra.mxu3 %v677_v2  ;;  %v680_v1 = vld [vmem:[%s1655_s20 + $0xeb0] sm:$0xff]  ;;  %v681_v2 = vld [vmem:[%s1655_s20 + $0xeb8] sm:$0xff] }
  0x97   : > { %978 = vmatpush.msrb.mxu0 %v254_v3  ;;  %998 = vmatpush.msrb.mxu1 %v255_v4  ;;  %v258_v3 = vld [vmem:[%s1655_s20 + $0x180] sm:$0xff]  ;;  %v259_v4 = vld [vmem:[%s1655_s20 + $0x188] sm:$0xff] }
  0x98   : > { %1086 = vmatpush.msra.mxu2 %v644_v5  ;;  %1106 = vmatpush.msra.mxu3 %v645_v6  ;;  %v648_v5 = vld [vmem:[%s1655_s20 + $0xdb0] sm:$0xff]  ;;  %v649_v6 = vld [vmem:[%s1655_s20 + $0xdb8] sm:$0xff] }
  0x99   : > { %979 = vmatpush.msrb.mxu0 %v222_v7  ;;  %999 = vmatpush.msrb.mxu1 %v223_v8  ;;  %v226_v7 = vld [vmem:[%s1655_s20 + $0x80] sm:$0xff]  ;;  %v227_v8 = vld [vmem:[%s1655_s20 + $0x88] sm:$0xff] }
  0x9a   : > { %980 = vmatmul.f32.vlgmr.msrb.gmra.mxu0 %v1766_v42  ;;  %1000 = vmatmul.f32.vlgmr.msrb.gmra.mxu1 %v1766_v42  ;;  %v549_v42 = vld [vmem:[%s1655_s20 + $0xa98] sm:$0xff] }
  0x9b   : > { %1044 = vmatpush.msra.mxu0 %v706_v9  ;;  %1064 = vmatpush.msra.mxu1 %v707_v10  ;;  %v710_v9 = vld [vmem:[%s1655_s20 + $0xfa0] sm:$0xff]  ;;  %v711_v10 = vld [vmem:[%s1655_s20 + $0xfa8] sm:$0xff] }
  0x9c   : > { %1087 = vmatpush.msra.mxu2 %v612_v11  ;;  %1107 = vmatpush.msra.mxu3 %v613_v12  ;;  %v616_v11 = vld [vmem:[%s1655_s20 + $0xcb0] sm:$0xff]  ;;  %v617_v12 = vld [vmem:[%s1655_s20 + $0xcb8] sm:$0xff] }
  0x9d   : > { %1045 = vmatpush.msra.mxu0 %v674_v13  ;;  %1065 = vmatpush.msra.mxu1 %v675_v14  ;;  %v678_v13 = vld [vmem:[%s1655_s20 + $0xea0] sm:$0xff]  ;;  %v679_v14 = vld [vmem:[%s1655_s20 + $0xea8] sm:$0xff] }
  0x9e   : > { %1088 = vmatpush.msra.mxu2 %v580_v15  ;;  %1108 = vmatpush.msra.mxu3 %v581_v16  ;;  %v584_v15 = vld [vmem:[%s1655_s20 + $0xbb0] sm:$0xff]  ;;  %v585_v16 = vld [vmem:[%s1655_s20 + $0xbb8] sm:$0xff] }
  0x9f   : > { %1046 = vmatpush.msra.mxu0 %v642_v17  ;;  %1066 = vmatpush.msra.mxu1 %v643_v18  ;;  %v646_v17 = vld [vmem:[%s1655_s20 + $0xda0] sm:$0xff]  ;;  %v647_v18 = vld [vmem:[%s1655_s20 + $0xda8] sm:$0xff] }
  0xa0   : > { %1089 = vmatpush.msra.mxu2 %v548_v19  ;;  %1109 = vmatpush.msra.mxu3 %v549_v42  ;;  %v552_v19 = vld [vmem:[%s1655_s20 + $0xab0] sm:$0xff]  ;;  %v553_v42 = vld [vmem:[%s1655_s20 + $0xab8] sm:$0xff] }
  0xa1   : > { %1047 = vmatpush.msra.mxu0 %v610_v20  ;;  %1067 = vmatpush.msra.mxu1 %v611_v21  ;;  %v614_v20 = vld [vmem:[%s1655_s20 + $0xca0] sm:$0xff]  ;;  %v615_v21 = vld [vmem:[%s1655_s20 + $0xca8] sm:$0xff] }
  0xa2   : > { %1090 = vmatpush.msra.mxu2 %v516_v22  ;;  %1110 = vmatpush.msra.mxu3 %v517_v23  ;;  %v520_v22 = vld [vmem:[%s1655_s20 + $0x9b0] sm:$0xff]  ;;  %v521_v23 = vld [vmem:[%s1655_s20 + $0x9b8] sm:$0xff] }
  0xa3   : > { %1048 = vmatpush.msra.mxu0 %v578_v24  ;;  %1068 = vmatpush.msra.mxu1 %v579_v25  ;;  %v582_v24 = vld [vmem:[%s1655_s20 + $0xba0] sm:$0xff]  ;;  %v583_v25 = vld [vmem:[%s1655_s20 + $0xba8] sm:$0xff] }
  0xa4   : > { %1091 = vmatpush.msra.mxu2 %v484_v26  ;;  %1111 = vmatpush.msra.mxu3 %v485_v27  ;;  %v488_v26 = vld [vmem:[%s1655_s20 + $0x8b0] sm:$0xff]  ;;  %v489_v27 = vld [vmem:[%s1655_s20 + $0x8b8] sm:$0xff] }
  0xa5   : > { %1049 = vmatpush.msra.mxu0 %v546_v28  ;;  %1069 = vmatpush.msra.mxu1 %v547_v29  ;;  %v550_v28 = vld [vmem:[%s1655_s20 + $0xaa0] sm:$0xff]  ;;  %v551_v29 = vld [vmem:[%s1655_s20 + $0xaa8] sm:$0xff] }
  0xa6   : > { %1092 = vmatpush.msra.mxu2 %v452_v30  ;;  %1112 = vmatpush.msra.mxu3 %v453_v31  ;;  %v456_v30 = vld [vmem:[%s1655_s20 + $0x7b0] sm:$0xff]  ;;  %v457_v31 = vld [vmem:[%s1655_s20 + $0x7b8] sm:$0xff] }
  0xa7   : > { %1050 = vmatpush.msra.mxu0 %v514_v32  ;;  %1070 = vmatpush.msra.mxu1 %v515_v33  ;;  %v518_v32 = vld [vmem:[%s1655_s20 + $0x9a0] sm:$0xff]  ;;  %v519_v33 = vld [vmem:[%s1655_s20 + $0x9a8] sm:$0xff] }
  0xa8   : > { %1093 = vmatpush.msra.mxu2 %v420_v34  ;;  %1113 = vmatpush.msra.mxu3 %v421_v35  ;;  %v424_v34 = vld [vmem:[%s1655_s20 + $0x6b0] sm:$0xff]  ;;  %v425_v35 = vld [vmem:[%s1655_s20 + $0x6b8] sm:$0xff] }
  0xa9   : > { %1051 = vmatpush.msra.mxu0 %v482_v36  ;;  %1071 = vmatpush.msra.mxu1 %v483_v37  ;;  %v486_v36 = vld [vmem:[%s1655_s20 + $0x8a0] sm:$0xff]  ;;  %v487_v37 = vld [vmem:[%s1655_s20 + $0x8a8] sm:$0xff] }
  0xaa   : > { %1094 = vmatpush.msra.mxu2 %v388_v38  ;;  %1114 = vmatpush.msra.mxu3 %v389_v39  ;;  %v392_v38 = vld [vmem:[%s1655_s20 + $0x5b0] sm:$0xff]  ;;  %v393_v39 = vld [vmem:[%s1655_s20 + $0x5b8] sm:$0xff] }
  0xab   : > { %1052 = vmatpush.msra.mxu0 %v450_v40  ;;  %1072 = vmatpush.msra.mxu1 %v451_v41  ;;  %v454_v40 = vld [vmem:[%s1655_s20 + $0x7a0] sm:$0xff]  ;;  %v455_v41 = vld [vmem:[%s1655_s20 + $0x7a8] sm:$0xff] }
  0xac   : > { %1095 = vmatpush.msra.mxu2 %v356_v43  ;;  %1115 = vmatpush.msra.mxu3 %v357_v44 }
  0xad   : > { %1053 = vmatpush.msra.mxu0 %v418_v45  ;;  %1073 = vmatpush.msra.mxu1 %v419_v46  ;;  %v360_v45 = vld [vmem:[%s1655_s20 + $0x4b0] sm:$0xff]  ;;  %v361_v46 = vld [vmem:[%s1655_s20 + $0x4b8] sm:$0xff] }
  0xae   : > { %1096 = vmatpush.msra.mxu2 %v324_v47  ;;  %1116 = vmatpush.msra.mxu3 %v325_v48 }
  0xaf   : > { %1054 = vmatpush.msra.mxu0 %v386_v49  ;;  %1074 = vmatpush.msra.mxu1 %v387_v50  ;;  %v422_v49 = vld [vmem:[%s1655_s20 + $0x6a0] sm:$0xff]  ;;  %v423_v50 = vld [vmem:[%s1655_s20 + $0x6a8] sm:$0xff] }
  0xb0   : > { %1097 = vmatpush.msra.mxu2 %v292_v51  ;;  %1117 = vmatpush.msra.mxu3 %v293_v52  ;;  %v2045_v51 = vstv %s2028_s23  ;;  %v328_v52 = vld [vmem:[%s1655_s20 + $0x3b0] sm:$0xff] }
  0xb1   : > { %1055 = vmatpush.msra.mxu0 %v354_v53  ;;  %1075 = vmatpush.msra.mxu1 %v355_v54  ;;  %v329_v53 = vld [vmem:[%s1655_s20 + $0x3b8] sm:$0xff]  ;;  %v2052_v54 = vld [vmem:[%s2298_s1] sm:$0x1] }
  0xb2   : > { %1098 = vmatpush.msra.mxu2 %v260_v55  ;;  %1118 = vmatpush.msra.mxu3 %v261_v56  ;;  %v390_v55 = vld [vmem:[%s1655_s20 + $0x5a0] sm:$0xff]  ;;  %v391_v56 = vld [vmem:[%s1655_s20 + $0x5a8] sm:$0xff] }
  0xb3   : > { %1056 = vmatpush.msra.mxu0 %v322_v57  ;;  %1076 = vmatpush.msra.mxu1 %v323_v58  ;;  %v296_v57 = vld [vmem:[%s1655_s20 + $0x2b0] sm:$0xff]  ;;  %v297_v58 = vld [vmem:[%s1655_s20 + $0x2b8] sm:$0xff] }
  0xb4   : > { %1099 = vmatpush.msra.mxu2 %v228_v59  ;;  %1119 = vmatpush.msra.mxu3 %v229_v60 }
  0xb5   : > { %1057 = vmatpush.msra.mxu0 %v290_v63  ;;  %1077 = vmatpush.msra.mxu1 %v291_v0  ;;  %v359_v63 = vld [vmem:[%s1655_s20 + $0x4a8] sm:$0xff]  ;;  %v264_v0 = vld [vmem:[%s1655_s20 + $0x1b0] sm:$0xff] }
  0xb6   : > { %1164 = vmatpush.msrb.mxu2 %v712_v61  ;;  %1184 = vmatpush.msrb.mxu3 %v713_v62  ;;  %v358_v62 = vld [vmem:[%s1655_s20 + $0x4a0] sm:$0xff] }
  0xb7   : > { %1058 = vmatpush.msra.mxu0 %v258_v3  ;;  %1078 = vmatpush.msra.mxu1 %v259_v4 }
  0xb8   : > { %1165 = vmatpush.msrb.mxu2 %v680_v1  ;;  %1185 = vmatpush.msrb.mxu3 %v681_v2  ;;  %v265_v1 = vld [vmem:[%s1655_s20 + $0x1b8] sm:$0xff] }
  0xb9   : > { %1059 = vmatpush.msra.mxu0 %v226_v7  ;;  %1079 = vmatpush.msra.mxu1 %v227_v8  ;;  %v327_v7 = vld [vmem:[%s1655_s20 + $0x3a8] sm:$0xff] }
  0xba   : > { %1166 = vmatpush.msrb.mxu2 %v648_v5  ;;  %1186 = vmatpush.msrb.mxu3 %v649_v6  ;;  %v326_v6 = vld [vmem:[%s1655_s20 + $0x3a0] sm:$0xff] }
  0xbb   : > { %1124 = vmatpush.msrb.mxu0 %v710_v9  ;;  %1144 = vmatpush.msrb.mxu1 %v711_v10  ;;  %v232_v10 = vld [vmem:[%s1655_s20 + $0xb0] sm:$0xff] }
  0xbc   : > { %1167 = vmatpush.msrb.mxu2 %v616_v11  ;;  %1187 = vmatpush.msrb.mxu3 %v617_v12  ;;  %v233_v11 = vld [vmem:[%s1655_s20 + $0xb8] sm:$0xff] }
  0xbd   : > { %1125 = vmatpush.msrb.mxu0 %v678_v13  ;;  %1145 = vmatpush.msrb.mxu1 %v679_v14 }
  0xbe   : > { %1168 = vmatpush.msrb.mxu2 %v584_v15  ;;  %1188 = vmatpush.msrb.mxu3 %v585_v16 }
  0xbf   : > { %1126 = vmatpush.msrb.mxu0 %v646_v17  ;;  %1146 = vmatpush.msrb.mxu1 %v647_v18  ;;  %v716_v18 = vld [vmem:[%s1655_s20 + $0xfd0] sm:$0xff] }
  0xc0   : > { %1169 = vmatpush.msrb.mxu2 %v552_v19  ;;  %1189 = vmatpush.msrb.mxu3 %v553_v42  ;;  %v717_v19 = vld [vmem:[%s1655_s20 + $0xfd8] sm:$0xff] }
  0xc1   : > { %1127 = vmatpush.msrb.mxu0 %v614_v20  ;;  %1147 = vmatpush.msrb.mxu1 %v615_v21 }
  0xc2   : > { %1170 = vmatpush.msrb.mxu2 %v520_v22  ;;  %1190 = vmatpush.msrb.mxu3 %v521_v23  ;;  %v294_v23 = vld [vmem:[%s1655_s20 + $0x2a0] sm:$0xff] }
  0xc3   : > { %1128 = vmatpush.msrb.mxu0 %v582_v24  ;;  %1148 = vmatpush.msrb.mxu1 %v583_v25  ;;  %v295_v24 = vld [vmem:[%s1655_s20 + $0x2a8] sm:$0xff] }
  0xc4   : > { %1171 = vmatpush.msrb.mxu2 %v488_v26  ;;  %1191 = vmatpush.msrb.mxu3 %v489_v27  ;;  %v684_v27 = vld [vmem:[%s1655_s20 + $0xed0] sm:$0xff] }
  0xc5   : > { %1129 = vmatpush.msrb.mxu0 %v550_v28  ;;  %1149 = vmatpush.msrb.mxu1 %v551_v29  ;;  %v685_v28 = vld [vmem:[%s1655_s20 + $0xed8] sm:$0xff] }
  0xc6   : > { %1172 = vmatpush.msrb.mxu2 %v456_v30  ;;  %1192 = vmatpush.msrb.mxu3 %v457_v31  ;;  %v781_v43 = vpop.f32.mrf.mxu2  ;;  %v801_v44 = vpop.f32.mrf.mxu3  ;;  %v262_v30 = vld [vmem:[%s1655_s20 + $0x1a0] sm:$0xff]  ;;  %v263_v31 = vld [vmem:[%s1655_s20 + $0x1a8] sm:$0xff] }
  0xc7   : > { %1130 = vmatpush.msrb.mxu0 %v518_v32  ;;  %1150 = vmatpush.msrb.mxu1 %v519_v33  ;;  %v782_v60 = vadd.f32 %v781_v43, %v2045_v51  ;;  %v802_v61 = vadd.f32 %v801_v44, %v2045_v51  ;;  %v620_v43 = vld [vmem:[%s1655_s20 + $0xcd0] sm:$0xff]  ;;  %v621_v44 = vld [vmem:[%s1655_s20 + $0xcd8] sm:$0xff] }
  0xc8   : > { %1173 = vmatpush.msrb.mxu2 %v424_v34  ;;  %1193 = vmatpush.msrb.mxu3 %v425_v35  ;;  %v741_v47 = vpop.f32.mrf.mxu0  ;;  %v761_v48 = vpop.f32.mrf.mxu1  ;;  %v652_v34 = vld [vmem:[%s1655_s20 + $0xdd0] sm:$0xff]  ;;  %v653_v35 = vld [vmem:[%s1655_s20 + $0xdd8] sm:$0xff] }
  0xc9   : > { %1131 = vmatpush.msrb.mxu0 %v486_v36  ;;  %1151 = vmatpush.msrb.mxu1 %v487_v37  ;;  %v762_v59 = vadd.f32 %v761_v48, %v2045_v51  ;;  %v742_v2 = vadd.f32 %v741_v47, %v2045_v51  ;;  %v1397_v4 = vrot.slane %v782_v60, 6  ;;  %v1398_v5 = vrot.slane %v802_v61, 5  ;;  %v230_v37 = vld [vmem:[%s1655_s20 + $0xa0] sm:$0xff]  ;;  %v588_v47 = vld [vmem:[%s1655_s20 + $0xbd0] sm:$0xff]  ;;  %v589_v48 = vld [vmem:[%s1655_s20 + $0xbd8] sm:$0xff] }
  0xca   : > { %1174 = vmatpush.msrb.mxu2 %v392_v38  ;;  %1194 = vmatpush.msrb.mxu3 %v393_v39  ;;  %v231_v38 = vld [vmem:[%s1655_s20 + $0xa8] sm:$0xff]  ;;  %v492_v61 = vld [vmem:[%s1655_s20 + $0x8d0] sm:$0xff] }
  0xcb   : > { %1132 = vmatpush.msrb.mxu0 %v454_v40  ;;  %1152 = vmatpush.msrb.mxu1 %v455_v41  ;;  %v1396_v3 = vrot.slane %v762_v59, 7  ;;  %v1427_v22 = vsel %vm1426_vm1, %v1397_v4, %v1398_v5  ;;  %v714_v40 = vld [vmem:[%s1655_s20 + $0xfc0] sm:$0xff]  ;;  %v715_v41 = vld [vmem:[%s1655_s20 + $0xfc8] sm:$0xff]  ;;  %v428_v5 = vld [vmem:[%s1655_s20 + $0x6d0] sm:$0xff] }
  0xcc   : > { %1175 = vmatpush.msrb.mxu2 %v360_v45  ;;  %1195 = vmatpush.msrb.mxu3 %v361_v46  ;;  %v682_v45 = vld [vmem:[%s1655_s20 + $0xec0] sm:$0xff]  ;;  %v683_v46 = vld [vmem:[%s1655_s20 + $0xec8] sm:$0xff] }
  0xcd   : > { %1100 = vmatmul.f32.vlgmr.msra.gmra.mxu2 %v2052_v54  ;;  %1120 = vmatmul.f32.vlgmr.msra.gmra.mxu3 %v2052_v54  ;;  %v1425_v21 = vsel %vm1424_vm0, %v742_v2, %v1396_v3  ;;  %v586_v59 = vld [vmem:[%s1655_s20 + $0xbc0] sm:$0xff]  ;;  %v587_v60 = vld [vmem:[%s1655_s20 + $0xbc8] sm:$0xff]  ;;  %v461_v2 = vld [vmem:[%s1655_s20 + $0x7d8] sm:$0xff] }
  0xce   : > { %1133 = vmatpush.msrb.mxu0 %v422_v49  ;;  %1153 = vmatpush.msrb.mxu1 %v423_v50  ;;  %v1429_v33 = vsel %vm1428_vm2, %v1425_v21, %v1427_v22  ;;  %v650_v49 = vld [vmem:[%s1655_s20 + $0xdc0] sm:$0xff]  ;;  %v651_v50 = vld [vmem:[%s1655_s20 + $0xdc8] sm:$0xff]  ;;  %v301_v21 = vld [vmem:[%s1655_s20 + $0x2d8] sm:$0xff] }
  0xcf   : > { %1176 = vmatpush.msrb.mxu2 %v328_v52  ;;  %1196 = vmatpush.msrb.mxu3 %v329_v53  ;;  %v556_v52 = vld [vmem:[%s1655_s20 + $0xad0] sm:$0xff]  ;;  %v557_v53 = vld [vmem:[%s1655_s20 + $0xad8] sm:$0xff]  ;;  %v522_v3 = vld [vmem:[%s1655_s20 + $0x9c0] sm:$0xff] }
  0xd0   : > { %1134 = vmatpush.msrb.mxu0 %v390_v55  ;;  %1154 = vmatpush.msrb.mxu1 %v391_v56  ;;  %v618_v55 = vld [vmem:[%s1655_s20 + $0xcc0] sm:$0xff]  ;;  %v619_v56 = vld [vmem:[%s1655_s20 + $0xcc8] sm:$0xff] }
  0xd1   : > { %1177 = vmatpush.msrb.mxu2 %v296_v57  ;;  %1197 = vmatpush.msrb.mxu3 %v297_v58  ;;  %v524_v57 = vld [vmem:[%s1655_s20 + $0x9d0] sm:$0xff]  ;;  %v525_v58 = vld [vmem:[%s1655_s20 + $0x9d8] sm:$0xff]  ;;  %v523_v4 = vld [vmem:[%s1655_s20 + $0x9c8] sm:$0xff] }
  0xd2   : > { %1135 = vmatpush.msrb.mxu0 %v358_v62  ;;  %1155 = vmatpush.msrb.mxu1 %v359_v63  ;;  %v861_v8 = vpop.f32.mrf.mxu2  ;;  %v881_v9 = vpop.f32.mrf.mxu3  ;;  %v493_v62 = vld [vmem:[%s1655_s20 + $0x8d8] sm:$0xff]  ;;  %v554_v63 = vld [vmem:[%s1655_s20 + $0xac0] sm:$0xff] }
  0xd3   : > { %1178 = vmatpush.msrb.mxu2 %v264_v0  ;;  %1198 = vmatpush.msrb.mxu3 %v265_v1  ;;  %v821_v12 = vpop.f32.mrf.mxu0  ;;  %v841_v13 = vpop.f32.mrf.mxu1  ;;  %v862_v14 = vadd.f32 %v861_v8, %v2045_v51  ;;  %v882_v15 = vadd.f32 %v881_v9, %v2045_v51  ;;  %v555_v0 = vld [vmem:[%s1655_s20 + $0xac8] sm:$0xff]  ;;  %v460_v1 = vld [vmem:[%s1655_s20 + $0x7d0] sm:$0xff]  ;;  %v362_v22 = vld [vmem:[%s1655_s20 + $0x4c0] sm:$0xff] }
  0xd4   : > { %1060 = vmatmul.f32.vlgmr.msra.gmra.mxu0 %v2052_v54  ;;  %1080 = vmatmul.f32.vlgmr.msra.gmra.mxu1 %v2052_v54  ;;  %v822_v16 = vadd.f32 %v821_v12, %v2045_v51  ;;  %v842_v17 = vadd.f32 %v841_v13, %v2045_v51  ;;  %v491_v8 = vld [vmem:[%s1655_s20 + $0x8c8] sm:$0xff]  ;;  %v396_v9 = vld [vmem:[%s1655_s20 + $0x5d0] sm:$0xff] }
  0xd5   : > { %1136 = vmatpush.msrb.mxu0 %v326_v6  ;;  %1156 = vmatpush.msrb.mxu1 %v327_v7  ;;  %v1401_v42 = vrot.slane %v862_v14, 2  ;;  %v1402_v20 = vrot.slane %v882_v15, 1  ;;  %v429_v6 = vld [vmem:[%s1655_s20 + $0x6d8] sm:$0xff]  ;;  %v490_v7 = vld [vmem:[%s1655_s20 + $0x8c0] sm:$0xff]  ;;  %v459_v12 = vld [vmem:[%s1655_s20 + $0x7c8] sm:$0xff] }
  0xd6   : > { %1179 = vmatpush.msrb.mxu2 %v232_v10  ;;  %1199 = vmatpush.msrb.mxu3 %v233_v11  ;;  %v1399_v25 = vrot.slane %v822_v16, 4  ;;  %v1400_v26 = vrot.slane %v842_v17, 3  ;;  %v397_v10 = vld [vmem:[%s1655_s20 + $0x5d8] sm:$0xff]  ;;  %v458_v11 = vld [vmem:[%s1655_s20 + $0x7c0] sm:$0xff]  ;;  %v364_v13 = vld [vmem:[%s1655_s20 + $0x4d0] sm:$0xff] }
  0xd7   : > { %1180 = vmatmul.f32.vlgmr.msrb.gmra.mxu2 %v2052_v54  ;;  %1200 = vmatmul.f32.vlgmr.msrb.gmra.mxu3 %v2052_v54  ;;  %v1433_v29 = vsel %vm1432_vm3, %v1401_v42, %v1402_v20  ;;  %v365_v14 = vld [vmem:[%s1655_s20 + $0x4d8] sm:$0xff]  ;;  %v426_v15 = vld [vmem:[%s1655_s20 + $0x6c0] sm:$0xff]  ;;  %v427_v16 = vld [vmem:[%s1655_s20 + $0x6c8] sm:$0xff] }
  0xd8   : > { %1244 = vmatpush.msra.mxu2 %v716_v18  ;;  %1264 = vmatpush.msra.mxu3 %v717_v19  ;;  %v1431_v32 = vsel %vm1430_vm4, %v1399_v25, %v1400_v26  ;;  %v332_v17 = vld [vmem:[%s1655_s20 + $0x3d0] sm:$0xff]  ;;  %v333_v18 = vld [vmem:[%s1655_s20 + $0x3d8] sm:$0xff]  ;;  %v394_v19 = vld [vmem:[%s1655_s20 + $0x5c0] sm:$0xff] }
  0xd9   : > { %1137 = vmatpush.msrb.mxu0 %v294_v23  ;;  %1157 = vmatpush.msrb.mxu1 %v295_v24  ;;  %v1435_v36 = vsel %vm1434_vm5, %v1431_v32, %v1433_v29  ;;  %v395_v42 = vld [vmem:[%s1655_s20 + $0x5c8] sm:$0xff]  ;;  %v300_v20 = vld [vmem:[%s1655_s20 + $0x2d0] sm:$0xff]  ;;  %v269_v25 = vld [vmem:[%s1655_s20 + $0x1d8] sm:$0xff] }
  0xda   : > { %1245 = vmatpush.msra.mxu2 %v684_v27  ;;  %1265 = vmatpush.msra.mxu3 %v685_v28  ;;  %v1437_v39 = vsel %vm1436_vm6, %v1429_v33, %v1435_v36  ;;  %v363_v23 = vld [vmem:[%s1655_s20 + $0x4c8] sm:$0xff]  ;;  %v268_v24 = vld [vmem:[%s1655_s20 + $0x1d0] sm:$0xff]  ;;  %v330_v26 = vld [vmem:[%s1655_s20 + $0x3c0] sm:$0xff] }
  0xdb   : > { %1138 = vmatpush.msrb.mxu0 %v262_v30  ;;  %1158 = vmatpush.msrb.mxu1 %v263_v31  ;;  %1463 = vst [vmem:[%s2098_s29] sm:$0xff] %v1437_v39  ;;  %v331_v27 = vld [vmem:[%s1655_s20 + $0x3c8] sm:$0xff]  ;;  %v236_v28 = vld [vmem:[%s1655_s20 + $0xd0] sm:$0xff]  ;;  %v237_v29 = vld [vmem:[%s1655_s20 + $0xd8] sm:$0xff] }
  0xdc   : > { %1246 = vmatpush.msra.mxu2 %v652_v34  ;;  %1266 = vmatpush.msra.mxu3 %v653_v35  ;;  %v720_v30 = vld [vmem:[%s1655_s20 + $0xff0] sm:$0xff]  ;;  %v721_v31 = vld [vmem:[%s1655_s20 + $0xff8] sm:$0xff]  ;;  %v298_v32 = vld [vmem:[%s1655_s20 + $0x2c0] sm:$0xff] }
  0xdd   : > { %1139 = vmatpush.msrb.mxu0 %v230_v37  ;;  %1159 = vmatpush.msrb.mxu1 %v231_v38  ;;  %v299_v33 = vld [vmem:[%s1655_s20 + $0x2c8] sm:$0xff]  ;;  %v688_v34 = vld [vmem:[%s1655_s20 + $0xef0] sm:$0xff]  ;;  %v689_v35 = vld [vmem:[%s1655_s20 + $0xef8] sm:$0xff] }
  0xde   : > { %1140 = vmatmul.f32.vlgmr.msrb.gmra.mxu0 %v2052_v54  ;;  %1160 = vmatmul.f32.vlgmr.msrb.gmra.mxu1 %v2052_v54  ;;  %v266_v36 = vld [vmem:[%s1655_s20 + $0x1c0] sm:$0xff]  ;;  %v267_v37 = vld [vmem:[%s1655_s20 + $0x1c8] sm:$0xff]  ;;  %v656_v38 = vld [vmem:[%s1655_s20 + $0xdf0] sm:$0xff] }
  0xdf   : > { %1204 = vmatpush.msra.mxu0 %v714_v40  ;;  %1224 = vmatpush.msra.mxu1 %v715_v41  ;;  %v657_v39 = vld [vmem:[%s1655_s20 + $0xdf8] sm:$0xff]  ;;  %v234_v40 = vld [vmem:[%s1655_s20 + $0xc0] sm:$0xff]  ;;  %v235_v41 = vld [vmem:[%s1655_s20 + $0xc8] sm:$0xff] }
  0xe0   : > { %1247 = vmatpush.msra.mxu2 %v620_v43  ;;  %1267 = vmatpush.msra.mxu3 %v621_v44  ;;  %v718_v43 = vld [vmem:[%s1655_s20 + $0xfe0] sm:$0xff]  ;;  %v719_v44 = vld [vmem:[%s1655_s20 + $0xfe8] sm:$0xff] }
  0xe1   : > { %1205 = vmatpush.msra.mxu0 %v682_v45  ;;  %1225 = vmatpush.msra.mxu1 %v683_v46  ;;  %v624_v45 = vld [vmem:[%s1655_s20 + $0xcf0] sm:$0xff]  ;;  %v625_v46 = vld [vmem:[%s1655_s20 + $0xcf8] sm:$0xff] }
  0xe2   : > { %1248 = vmatpush.msra.mxu2 %v588_v47  ;;  %1268 = vmatpush.msra.mxu3 %v589_v48  ;;  %v686_v47 = vld [vmem:[%s1655_s20 + $0xee0] sm:$0xff]  ;;  %v687_v48 = vld [vmem:[%s1655_s20 + $0xee8] sm:$0xff] }
  0xe3   : > { %1206 = vmatpush.msra.mxu0 %v650_v49  ;;  %1226 = vmatpush.msra.mxu1 %v651_v50  ;;  %v592_v49 = vld [vmem:[%s1655_s20 + $0xbf0] sm:$0xff]  ;;  %v593_v50 = vld [vmem:[%s1655_s20 + $0xbf8] sm:$0xff] }
  0xe4   : > { %1249 = vmatpush.msra.mxu2 %v556_v52  ;;  %1269 = vmatpush.msra.mxu3 %v557_v53  ;;  %v654_v52 = vld [vmem:[%s1655_s20 + $0xde0] sm:$0xff]  ;;  %v655_v53 = vld [vmem:[%s1655_s20 + $0xde8] sm:$0xff] }
  0xe5   : > { %1207 = vmatpush.msra.mxu0 %v618_v55  ;;  %1227 = vmatpush.msra.mxu1 %v619_v56  ;;  %v560_v55 = vld [vmem:[%s1655_s20 + $0xaf0] sm:$0xff]  ;;  %v561_v56 = vld [vmem:[%s1655_s20 + $0xaf8] sm:$0xff] }
  0xe6   : > { %1250 = vmatpush.msra.mxu2 %v524_v57  ;;  %1270 = vmatpush.msra.mxu3 %v525_v58  ;;  %v622_v57 = vld [vmem:[%s1655_s20 + $0xce0] sm:$0xff]  ;;  %v623_v58 = vld [vmem:[%s1655_s20 + $0xce8] sm:$0xff] }
  0xe7   : > { %1208 = vmatpush.msra.mxu0 %v586_v59  ;;  %1228 = vmatpush.msra.mxu1 %v587_v60  ;;  %v528_v59 = vld [vmem:[%s1655_s20 + $0x9f0] sm:$0xff]  ;;  %v529_v60 = vld [vmem:[%s1655_s20 + $0x9f8] sm:$0xff] }
  0xe8   : > { %1251 = vmatpush.msra.mxu2 %v492_v61  ;;  %1271 = vmatpush.msra.mxu3 %v493_v62  ;;  %v590_v61 = vld [vmem:[%s1655_s20 + $0xbe0] sm:$0xff]  ;;  %v591_v62 = vld [vmem:[%s1655_s20 + $0xbe8] sm:$0xff] }
  0xe9   : > { %1209 = vmatpush.msra.mxu0 %v554_v63  ;;  %1229 = vmatpush.msra.mxu1 %v555_v0  ;;  %v496_v63 = vld [vmem:[%s1655_s20 + $0x8f0] sm:$0xff]  ;;  %v497_v0 = vld [vmem:[%s1655_s20 + $0x8f8] sm:$0xff] }
  0xea   : > { %1252 = vmatpush.msra.mxu2 %v460_v1  ;;  %1272 = vmatpush.msra.mxu3 %v461_v2  ;;  %v558_v1 = vld [vmem:[%s1655_s20 + $0xae0] sm:$0xff]  ;;  %v559_v2 = vld [vmem:[%s1655_s20 + $0xae8] sm:$0xff] }
  0xeb   : > { %1210 = vmatpush.msra.mxu0 %v522_v3  ;;  %1230 = vmatpush.msra.mxu1 %v523_v4  ;;  %v464_v3 = vld [vmem:[%s1655_s20 + $0x7f0] sm:$0xff]  ;;  %v465_v4 = vld [vmem:[%s1655_s20 + $0x7f8] sm:$0xff] }
  0xec   : > { %1253 = vmatpush.msra.mxu2 %v428_v5  ;;  %1273 = vmatpush.msra.mxu3 %v429_v6  ;;  %v526_v5 = vld [vmem:[%s1655_s20 + $0x9e0] sm:$0xff]  ;;  %v527_v6 = vld [vmem:[%s1655_s20 + $0x9e8] sm:$0xff] }
  0xed   : > { %1211 = vmatpush.msra.mxu0 %v490_v7  ;;  %1231 = vmatpush.msra.mxu1 %v491_v8  ;;  %v432_v7 = vld [vmem:[%s1655_s20 + $0x6f0] sm:$0xff]  ;;  %v433_v8 = vld [vmem:[%s1655_s20 + $0x6f8] sm:$0xff] }
  0xee   : > { %1254 = vmatpush.msra.mxu2 %v396_v9  ;;  %1274 = vmatpush.msra.mxu3 %v397_v10  ;;  %v494_v9 = vld [vmem:[%s1655_s20 + $0x8e0] sm:$0xff]  ;;  %v495_v10 = vld [vmem:[%s1655_s20 + $0x8e8] sm:$0xff] }
  0xef   : > { %1212 = vmatpush.msra.mxu0 %v458_v11  ;;  %1232 = vmatpush.msra.mxu1 %v459_v12  ;;  %v400_v11 = vld [vmem:[%s1655_s20 + $0x5f0] sm:$0xff]  ;;  %v401_v12 = vld [vmem:[%s1655_s20 + $0x5f8] sm:$0xff] }
  0xf0   : > { %1255 = vmatpush.msra.mxu2 %v364_v13  ;;  %1275 = vmatpush.msra.mxu3 %v365_v14 }
  0xf1   : > { %1213 = vmatpush.msra.mxu0 %v426_v15  ;;  %1233 = vmatpush.msra.mxu1 %v427_v16  ;;  %v462_v15 = vld [vmem:[%s1655_s20 + $0x7e0] sm:$0xff]  ;;  %v463_v16 = vld [vmem:[%s1655_s20 + $0x7e8] sm:$0xff] }
  0xf2   : > { %1256 = vmatpush.msra.mxu2 %v332_v17  ;;  %1276 = vmatpush.msra.mxu3 %v333_v18 }
  0xf3   : > { %1214 = vmatpush.msra.mxu0 %v394_v19  ;;  %1234 = vmatpush.msra.mxu1 %v395_v42  ;;  %v368_v19 = vld [vmem:[%s1655_s20 + $0x4f0] sm:$0xff]  ;;  %v369_v42 = vld [vmem:[%s1655_s20 + $0x4f8] sm:$0xff] }
  0xf4   : > { %1257 = vmatpush.msra.mxu2 %v300_v20  ;;  %1277 = vmatpush.msra.mxu3 %v301_v21  ;;  %v430_v20 = vld [vmem:[%s1655_s20 + $0x6e0] sm:$0xff]  ;;  %v431_v21 = vld [vmem:[%s1655_s20 + $0x6e8] sm:$0xff] }
  0xf5   : > { %1215 = vmatpush.msra.mxu0 %v362_v22  ;;  %1235 = vmatpush.msra.mxu1 %v363_v23  ;;  %v336_v22 = vld [vmem:[%s1655_s20 + $0x3f0] sm:$0xff]  ;;  %v337_v23 = vld [vmem:[%s1655_s20 + $0x3f8] sm:$0xff] }
  0xf6   : > { %1258 = vmatpush.msra.mxu2 %v268_v24  ;;  %1278 = vmatpush.msra.mxu3 %v269_v25  ;;  %v398_v24 = vld [vmem:[%s1655_s20 + $0x5e0] sm:$0xff]  ;;  %v399_v25 = vld [vmem:[%s1655_s20 + $0x5e8] sm:$0xff] }
  0xf7   : > { %1216 = vmatpush.msra.mxu0 %v330_v26  ;;  %1236 = vmatpush.msra.mxu1 %v331_v27  ;;  %v304_v26 = vld [vmem:[%s1655_s20 + $0x2f0] sm:$0xff]  ;;  %v305_v27 = vld [vmem:[%s1655_s20 + $0x2f8] sm:$0xff] }
  0xf8   : > { %1259 = vmatpush.msra.mxu2 %v236_v28  ;;  %1279 = vmatpush.msra.mxu3 %v237_v29 }
  0xf9   : > { %1217 = vmatpush.msra.mxu0 %v298_v32  ;;  %1237 = vmatpush.msra.mxu1 %v299_v33  ;;  %v367_v32 = vld [vmem:[%s1655_s20 + $0x4e8] sm:$0xff]  ;;  %v272_v33 = vld [vmem:[%s1655_s20 + $0x1f0] sm:$0xff] }
  0xfa   : > { %1324 = vmatpush.msrb.mxu2 %v720_v30  ;;  %1344 = vmatpush.msrb.mxu3 %v721_v31  ;;  %v366_v31 = vld [vmem:[%s1655_s20 + $0x4e0] sm:$0xff] }
  0xfb   : > { %1218 = vmatpush.msra.mxu0 %v266_v36  ;;  %1238 = vmatpush.msra.mxu1 %v267_v37 }
  0xfc   : > { %1325 = vmatpush.msrb.mxu2 %v688_v34  ;;  %1345 = vmatpush.msrb.mxu3 %v689_v35  ;;  %v273_v34 = vld [vmem:[%s1655_s20 + $0x1f8] sm:$0xff] }
  0xfd   : > { %1219 = vmatpush.msra.mxu0 %v234_v40  ;;  %1239 = vmatpush.msra.mxu1 %v235_v41  ;;  %v335_v40 = vld [vmem:[%s1655_s20 + $0x3e8] sm:$0xff] }
  0xfe   : > { %1326 = vmatpush.msrb.mxu2 %v656_v38  ;;  %1346 = vmatpush.msrb.mxu3 %v657_v39  ;;  %v334_v39 = vld [vmem:[%s1655_s20 + $0x3e0] sm:$0xff] }
  0xff   : > { %1284 = vmatpush.msrb.mxu0 %v718_v43  ;;  %1304 = vmatpush.msrb.mxu1 %v719_v44  ;;  %v240_v44 = vld [vmem:[%s1655_s20 + $0xf0] sm:$0xff] }
 0x100   : > { %1327 = vmatpush.msrb.mxu2 %v624_v45  ;;  %1347 = vmatpush.msrb.mxu3 %v625_v46  ;;  %v241_v45 = vld [vmem:[%s1655_s20 + $0xf8] sm:$0xff] }
 0x101   : > { %1285 = vmatpush.msrb.mxu0 %v686_v47  ;;  %1305 = vmatpush.msrb.mxu1 %v687_v48 }
 0x102   : > { %1328 = vmatpush.msrb.mxu2 %v592_v49  ;;  %1348 = vmatpush.msrb.mxu3 %v593_v50 }
 0x103   : > { %1286 = vmatpush.msrb.mxu0 %v654_v52  ;;  %1306 = vmatpush.msrb.mxu1 %v655_v53  ;;  %v302_v53 = vld [vmem:[%s1655_s20 + $0x2e0] sm:$0xff] }
 0x104   : > { %1329 = vmatpush.msrb.mxu2 %v560_v55  ;;  %1349 = vmatpush.msrb.mxu3 %v561_v56  ;;  %v303_v55 = vld [vmem:[%s1655_s20 + $0x2e8] sm:$0xff] }
 0x105   : > { %1287 = vmatpush.msrb.mxu0 %v622_v57  ;;  %1307 = vmatpush.msrb.mxu1 %v623_v58 }
 0x106   : > { %1330 = vmatpush.msrb.mxu2 %v528_v59  ;;  %1350 = vmatpush.msrb.mxu3 %v529_v60 }
 0x107   : > { %1288 = vmatpush.msrb.mxu0 %v590_v61  ;;  %1308 = vmatpush.msrb.mxu1 %v591_v62  ;;  %v270_v62 = vld [vmem:[%s1655_s20 + $0x1e0] sm:$0xff] }
 0x108   : > { %1331 = vmatpush.msrb.mxu2 %v496_v63  ;;  %1351 = vmatpush.msrb.mxu3 %v497_v0  ;;  %v271_v63 = vld [vmem:[%s1655_s20 + $0x1e8] sm:$0xff] }
 0x109   : > { %1289 = vmatpush.msrb.mxu0 %v558_v1  ;;  %1309 = vmatpush.msrb.mxu1 %v559_v2 }
 0x10a   : > { %1332 = vmatpush.msrb.mxu2 %v464_v3  ;;  %1352 = vmatpush.msrb.mxu3 %v465_v4  ;;  %v238_v3 = vld [vmem:[%s1655_s20 + $0xe0] sm:$0xff]  ;;  %v239_v4 = vld [vmem:[%s1655_s20 + $0xe8] sm:$0xff] }
 0x10b   : > { %1290 = vmatpush.msrb.mxu0 %v526_v5  ;;  %1310 = vmatpush.msrb.mxu1 %v527_v6 }
 0x10c   : > { %1333 = vmatpush.msrb.mxu2 %v432_v7  ;;  %1353 = vmatpush.msrb.mxu3 %v433_v8  ;;  %v941_v13 = vpop.f32.mrf.mxu2  ;;  %v961_v14 = vpop.f32.mrf.mxu3 }
 0x10d   : > { %1291 = vmatpush.msrb.mxu0 %v494_v9  ;;  %1311 = vmatpush.msrb.mxu1 %v495_v10  ;;  %v901_v17 = vpop.f32.mrf.mxu0  ;;  %v921_v18 = vpop.f32.mrf.mxu1  ;;  %v942_v29 = vadd.f32 %v941_v13, %v2045_v51  ;;  %v962_v30 = vadd.f32 %v961_v14, %v2045_v51 }
 0x10e   : > { %1334 = vmatpush.msrb.mxu2 %v400_v11  ;;  %1354 = vmatpush.msrb.mxu3 %v401_v12  ;;  %v922_v28 = vadd.f32 %v921_v18, %v2045_v51  ;;  %v902_v35 = vadd.f32 %v901_v17, %v2045_v51 }
 0x10f   : > { %1260 = vmatmul.f32.vlgmr.msra.gmra.mxu2 %v2052_v54  ;;  %1280 = vmatmul.f32.vlgmr.msra.gmra.mxu3 %v2052_v54  ;;  %v1404_v37 = vrot.slane %v942_v29, 6  ;;  %v1405_v38 = vrot.slane %v962_v30, 5 }
 0x110   : > { %1292 = vmatpush.msrb.mxu0 %v462_v15  ;;  %1312 = vmatpush.msrb.mxu1 %v463_v16  ;;  %v1403_v36 = vrot.slane %v922_v28, 7 }
 0x111   : > { %1335 = vmatpush.msrb.mxu2 %v368_v19  ;;  %1355 = vmatpush.msrb.mxu3 %v369_v42  ;;  %v1439_v59 = vsel %vm1426_vm1, %v1404_v37, %v1405_v38 }
 0x112   : > { %1293 = vmatpush.msrb.mxu0 %v430_v20  ;;  %1313 = vmatpush.msrb.mxu1 %v431_v21  ;;  %v1438_v58 = vsel %vm1424_vm0, %v902_v35, %v1403_v36 }
 0x113   : > { %1336 = vmatpush.msrb.mxu2 %v336_v22  ;;  %1356 = vmatpush.msrb.mxu3 %v337_v23  ;;  %v1440_v2 = vsel %vm1428_vm2, %v1438_v58, %v1439_v59 }
 0x114   : > { %1294 = vmatpush.msrb.mxu0 %v398_v24  ;;  %1314 = vmatpush.msrb.mxu1 %v399_v25 }
 0x115   : > { %1337 = vmatpush.msrb.mxu2 %v304_v26  ;;  %1357 = vmatpush.msrb.mxu3 %v305_v27 }
 0x116   : > { %1240 = vmatmul.f32.vlgmr.msra.gmra.mxu1 %v2052_v54  ;;  %1295 = vmatpush.msrb.mxu0 %v366_v31  ;;  %v1021_v41 = vpop.f32.mrf.mxu2  ;;  %v1041_v43 = vpop.f32.mrf.mxu3 }
 0x117   : > { %1315 = vmatpush.msrb.mxu1 %v367_v32  ;;  %1338 = vmatpush.msrb.mxu2 %v272_v33  ;;  %v981_v46 = vpop.f32.mrf.mxu0  ;;  %v1001_v47 = vpop.f32.mrf.mxu1  ;;  %v1022_v48 = vadd.f32 %v1021_v41, %v2045_v51  ;;  %v1042_v49 = vadd.f32 %v1041_v43, %v2045_v51 }
 0x118   : > { %1358 = vmatpush.msrb.mxu3 %v273_v34  ;;  %1220 = vmatmul.f32.vlgmr.msra.gmra.mxu0 %v2052_v54  ;;  %v982_v50 = vadd.f32 %v981_v46, %v2045_v51  ;;  %v1002_v52 = vadd.f32 %v1001_v47, %v2045_v51 }
 0x119   : > { %1296 = vmatpush.msrb.mxu0 %v334_v39  ;;  %1316 = vmatpush.msrb.mxu1 %v335_v40  ;;  %v1408_v56 = vrot.slane %v1022_v48, 2  ;;  %v1409_v57 = vrot.slane %v1042_v49, 1 }
 0x11a   : > { %1339 = vmatpush.msrb.mxu2 %v240_v44  ;;  %1359 = vmatpush.msrb.mxu3 %v241_v45  ;;  %v1406_v60 = vrot.slane %v982_v50, 4  ;;  %v1407_v61 = vrot.slane %v1002_v52, 3 }
 0x11b   : > { %1340 = vmatmul.f32.vlgmr.msrb.gmra.mxu2 %v2052_v54  ;;  %1360 = vmatmul.f32.vlgmr.msrb.gmra.mxu3 %v2052_v54  ;;  %v1442_v0 = vsel %vm1432_vm3, %v1408_v56, %v1409_v57 }
 0x11c   : > { %1297 = vmatpush.msrb.mxu0 %v302_v53  ;;  %1317 = vmatpush.msrb.mxu1 %v303_v55  ;;  %v1441_v1 = vsel %vm1430_vm4, %v1406_v60, %v1407_v61 }
 0x11d   : > { %v1443_v5 = vsel %vm1434_vm5, %v1441_v1, %v1442_v0 }
 0x11e   : > { %1298 = vmatpush.msrb.mxu0 %v270_v62  ;;  %1318 = vmatpush.msrb.mxu1 %v271_v63  ;;  %v1444_v6 = vsel %vm1436_vm6, %v1440_v2, %v1443_v5 }
 0x11f   : > { %1464 = vst [vmem:[%s2098_s29 + $0x8] sm:$0xff] %v1444_v6 }
 0x120   : > { %1299 = vmatpush.msrb.mxu0 %v238_v3  ;;  %1319 = vmatpush.msrb.mxu1 %v239_v4 }
 0x121   : > { %1300 = vmatmul.f32.vlgmr.msrb.gmra.mxu0 %v2052_v54  ;;  %1320 = vmatmul.f32.vlgmr.msrb.gmra.mxu1 %v2052_v54 }
 0x150   : > { %v1101_v7 = vpop.f32.mrf.mxu2  ;;  %v1121_v8 = vpop.f32.mrf.mxu3 }
 0x151   : > { %v1061_v9 = vpop.f32.mrf.mxu0  ;;  %v1081_v10 = vpop.f32.mrf.mxu1  ;;  %v1102_v12 = vadd.f32 %v1101_v7, %v2045_v51  ;;  %v1122_v13 = vadd.f32 %v1121_v8, %v2045_v51 }
 0x152   : > { %v1082_v11 = vadd.f32 %v1081_v10, %v2045_v51  ;;  %v1062_v14 = vadd.f32 %v1061_v9, %v2045_v51 }
 0x153   : > { %v1411_v16 = vrot.slane %v1102_v12, 6  ;;  %v1412_v17 = vrot.slane %v1122_v13, 5 }
 0x154   : > { %v1410_v15 = vrot.slane %v1082_v11, 7 }
 0x155   : > { %v1446_v27 = vsel %vm1426_vm1, %v1411_v16, %v1412_v17 }
 0x156   : > { %v1445_v26 = vsel %vm1424_vm0, %v1062_v14, %v1410_v15 }
 0x157   : > { %v1447_v32 = vsel %vm1428_vm2, %v1445_v26, %v1446_v27 }
 0x15a   : > { %v1181_v18 = vpop.f32.mrf.mxu2  ;;  %v1201_v19 = vpop.f32.mrf.mxu3 }
 0x15b   : > { %v1141_v42 = vpop.f32.mrf.mxu0  ;;  %v1161_v20 = vpop.f32.mrf.mxu1  ;;  %v1182_v54 = vadd.f32 %v1181_v18, %v2045_v51  ;;  %v1202_v21 = vadd.f32 %v1201_v19, %v2045_v51 }
 0x15c   : > { %v1142_v22 = vadd.f32 %v1141_v42, %v2045_v51  ;;  %v1162_v23 = vadd.f32 %v1161_v20, %v2045_v51 }
 0x15d   : > { %v1415_v24 = vrot.slane %v1182_v54, 2  ;;  %v1416_v25 = vrot.slane %v1202_v21, 1 }
 0x15e   : > { %v1413_v28 = vrot.slane %v1142_v22, 4  ;;  %v1414_v29 = vrot.slane %v1162_v23, 3 }
 0x15f   : > { %v1449_v30 = vsel %vm1432_vm3, %v1415_v24, %v1416_v25 }
 0x160   : > { %v1448_v31 = vsel %vm1430_vm4, %v1413_v28, %v1414_v29 }
 0x161   : > { %v1450_v33 = vsel %vm1434_vm5, %v1448_v31, %v1449_v30 }
 0x162   : > { %v1451_v34 = vsel %vm1436_vm6, %v1447_v32, %v1450_v33 }
 0x163   : > { %1465 = vst [vmem:[%s2098_s29 + $0x10] sm:$0xff] %v1451_v34 }
 0x192   : > { %v1261_v37 = vpop.f32.mrf.mxu2  ;;  %v1281_v38 = vpop.f32.mrf.mxu3 }
 0x193   : > { %v1241_v36 = vpop.f32.mrf.mxu1  ;;  %v1262_v40 = vadd.f32 %v1261_v37, %v2045_v51  ;;  %v1282_v41 = vadd.f32 %v1281_v38, %v2045_v51 }
 0x194   : > { %v1242_v39 = vadd.f32 %v1241_v36, %v2045_v51 }
 0x195   : > { %v1221_v35 = vpop.f32.mrf.mxu0  ;;  %v1418_v44 = vrot.slane %v1262_v40, 6  ;;  %v1419_v45 = vrot.slane %v1282_v41, 5 }
 0x196   : > { %v1417_v43 = vrot.slane %v1242_v39, 7  ;;  %v1222_v46 = vadd.f32 %v1221_v35, %v2045_v51 }
 0x197   : > { %v1453_v59 = vsel %vm1426_vm1, %v1418_v44, %v1419_v45 }
 0x198   : > { %v1452_v60 = vsel %vm1424_vm0, %v1222_v46, %v1417_v43 }
 0x199   : > { %v1454_v1 = vsel %vm1428_vm2, %v1452_v60, %v1453_v59 }
 0x19e   : > { %v1301_v47 = vpop.f32.mrf.mxu0  ;;  %v1321_v48 = vpop.f32.mrf.mxu1 }
 0x19f   : > { %v1302_v49 = vadd.f32 %v1301_v47, %v2045_v51  ;;  %v1322_v50 = vadd.f32 %v1321_v48, %v2045_v51  ;;  %v1341_v52 = vpop.f32.mrf.mxu2  ;;  %v1361_v53 = vpop.f32.mrf.mxu3 }
 0x1a0   : > { %v1342_v55 = vadd.f32 %v1341_v52, %v2045_v51  ;;  %v1362_v56 = vadd.f32 %v1361_v53, %v2045_v51 }
 0x1a1   : > { %v1420_v57 = vrot.slane %v1302_v49, 4  ;;  %v1421_v58 = vrot.slane %v1322_v50, 3 }
 0x1a2   : > { %v1422_v61 = vrot.slane %v1342_v55, 2  ;;  %v1423_v62 = vrot.slane %v1362_v56, 1 }
 0x1a3   : > { %v1455_v63 = vsel %vm1430_vm4, %v1420_v57, %v1421_v58 }
 0x1a4   : > { %v1456_v0 = vsel %vm1432_vm3, %v1422_v61, %v1423_v62 }
 0x1a5   : > { %v1457_v2 = vsel %vm1434_vm5, %v1455_v63, %v1456_v0 }
 0x1a6   : > { %v1458_v3 = vsel %vm1436_vm6, %v1454_v1, %v1457_v2 }
 0x1a7   : > { %1466 = vst [vmem:[%s2098_s29 + $0x18] sm:$0xff] %v1458_v3 }
 0x1a8 PF: > { %s14_s16 = sadd.s32 1, %s1606_s16   ;;  %s2301_s14 = smov %s1602_s15 }
 0x1a9   : > { %p11_p5 = scmp.ge.s32.totalorder %s14_s16, 4   ;;  %s2302_s15 = smov %s2304_s2 }
 0x1ab   :  { %13 = sbr.rel (!%p11_p5) target bundleno = 2 (0x2), region = 62 }

</bundles_post_ra>
